<compile_context>
chip_gen: v7x
topology: tpu7x:2x2x1
jax: 0.10.0
libtpu: 0.0.40
codegen_flags: <defaults>
</compile_context>

<pallas_src>
import jax
import jax.numpy as jnp
from jax.experimental import pallas as pl
from jax.experimental.pallas import tpu as pltpu

N_SRC = 4      # number of separator outputs ("n_src*2" in the docstring)
HIDDEN = 128   # separator hidden width
T = 256        # n_samples (time)
N_BATCH = 32   # must be even; chosen so half=16 gives full-sublane 8-row blocks


def _mixit_kernel(mix0_ref, mix1_ref, w1_ref, b1_ref, w2_ref, b2_ref,
                  y_ref, loss_ref):
    t = mix0_ref.shape[-1]
    mix0 = mix0_ref[...]                     # (BH, T) f32
    mix1 = mix1_ref[...]                     # (BH, T) f32
    mom = mix0 + mix1                        # mixture of mixtures

    # ---- separator: 2-layer masking MLP, each layer one MXU matmul ----
    hidden = jnp.dot(mom, w1_ref[...],
                     preferred_element_type=jnp.float32) + b1_ref[...]
    hidden = jnp.maximum(hidden, 0.0)
    # fused 2nd layer: (BH, H) @ (H, N_SRC*T) -> (BH, N_SRC*T); lane = s*T + t
    logits = jnp.dot(hidden, w2_ref[...],
                     preferred_element_type=jnp.float32) + b2_ref[...]

    # ---- softmax over sources (sources are 128-aligned lane chunks) ----
    chunks = [logits[:, s * t:(s + 1) * t] for s in range(N_SRC)]
    mmax = chunks[0]
    for s in range(1, N_SRC):
        mmax = jnp.maximum(mmax, chunks[s])
    exps = [jnp.exp(c - mmax) for c in chunks]
    den = exps[0]
    for s in range(1, N_SRC):
        den = den + exps[s]
    # exact reciprocal kept to guarantee the 1e-4 output tolerance vs the f32
    # reference; switch to approx=True (EUP vrcp) if the tolerance is relaxed.
    scale = pl.reciprocal(den, approx=False) * mom        # (BH, T)
    ys = [e * scale for e in exps]                        # masked sources

    # single dense (BH, N_SRC*T) store -> unmasked full-tile vst
    y_ref[...] = jnp.concatenate(ys, axis=-1).astype(y_ref.dtype)

    # ---- generalized MixIT loss via Gram / inner-product reformulation ----
    #   ||est0 - mix0||^2 + ||est1 - mix1||^2
    # = sum_s G[s,s] + ||mix0||^2 + ||mix1||^2
    #   + 2 * sum_{s<q, sel_s==sel_q} G[s,q]
    #   - 2 * sum_s (sel_s ? <y_s,mix0> : <y_s,mix1>)
    def ip(a, b):
        return jnp.sum(a * b, axis=-1, keepdims=True)     # (BH, 1)

    gram = {}
    for s in range(N_SRC):
        for q in range(s, N_SRC):
            gram[(s, q)] = ip(ys[s], ys[q])
    d0 = [ip(y_s, mix0) for y_s in ys]
    d1 = [ip(y_s, mix1) for y_s in ys]

    base = ip(mix0, mix0) + ip(mix1, mix1)
    for s in range(N_SRC):
        base = base + gram[(s, s)]

    best = None
    for a in range(2 ** N_SRC):                           # unrolled, 16 assignments
        sel = [(a >> s) & 1 for s in range(N_SRC)]
        la = base
        for s in range(N_SRC):
            la = la - 2.0 * (d0[s] if sel[s] else d1[s])
            for q in range(s + 1, N_SRC):
                if sel[s] == sel[q]:
                    la = la + 2.0 * gram[(s, q)]
        best = la if best is None else jnp.minimum(best, la)

    # per-row loss = min-assignment SSE / (n_mix * T); batch mean done on host
    loss_ref[...] = best / (2.0 * t)


def mixit_loss_forward(mix, w1, b1, w2, b2):
    """mix: (n_batch, T). w1: (T, H). b1: (1, H). w2: (H, N_SRC*T). b2: (1, N_SRC*T)."""
    n_batch, n_samples = mix.shape
    assert n_batch % 2 == 0, mix.shape
    half = n_batch // 2
    n_flat = w2.shape[-1]                                 # N_SRC * T

    if half % 8 == 0:
        # batch tiled in full-sublane 8-row blocks; the two mixture halves are
        # read from the SAME (B, T) array via two BlockSpecs (no host stack).
        bh = 8
        mix0_in, mix1_in = mix, mix
        off = half // bh            # block-row offset of the second half
    else:
        # tiny-batch fallback: pre-slice halves so block == full array dims
        bh = half
        mix0_in, mix1_in = mix[:half], mix[half:]
        off = 0
    nblk = half // bh

    y_flat, loss_rows = pl.pallas_call(
        _mixit_kernel,
        grid=(nblk,),
        in_specs=[
            pl.BlockSpec((bh, n_samples), lambda i: (i, 0)),        # first half
            pl.BlockSpec((bh, n_samples), lambda i: (i + off, 0)),  # second half
            pl.BlockSpec(w1.shape, lambda i: (0, 0)),
            pl.BlockSpec(b1.shape, lambda i: (0, 0)),
            pl.BlockSpec(w2.shape, lambda i: (0, 0)),
            pl.BlockSpec(b2.shape, lambda i: (0, 0)),
        ],
        out_specs=[
            pl.BlockSpec((bh, n_flat), lambda i: (i, 0)),
            pl.BlockSpec((bh, 1), lambda i: (i, 0)),
        ],
        out_shape=[
            jax.ShapeDtypeStruct((half, n_flat), jnp.float32),
            jax.ShapeDtypeStruct((half, 1), jnp.float32),
        ],
        compiler_params=pltpu.CompilerParams(
            dimension_semantics=("parallel",)),   # megacore sharding on v7x
    )(mix0_in, mix1_in, w1, b1, w2, b2)

    y = y_flat.reshape(half, N_SRC, n_samples)    # free row-major view reshape
    loss = jnp.mean(loss_rows).reshape(1)
    return y, loss


def _reference(mix, w1, b1, w2, b2):
    """Pure-JAX reference of the original (brute-force) forward semantics."""
    half = mix.shape[0] // 2
    mix_s = jnp.stack((mix[:half], mix[half:]), axis=-2)          # (B2, 2, T)
    mom = mix_s.sum(axis=-2)
    hidden = jax.nn.relu(mom @ w1 + b1)
    logits = (hidden @ w2 + b2).reshape(half, N_SRC, mom.shape[-1])
    masks = jax.nn.softmax(logits, axis=1)
    y = masks * mom[:, None, :]
    per_assign = []
    for a in range(2 ** N_SRC):
        sel = jnp.array([(a >> s) & 1 for s in range(N_SRC)], jnp.float32)
        est0 = jnp.einsum('s,bst->bt', sel, y)
        est1 = jnp.einsum('s,bst->bt', 1.0 - sel, y)
        est = jnp.stack([est0, est1], axis=1)
        per_assign.append(jnp.mean((est - mix_s) ** 2, axis=(1, 2)))
    best = jnp.min(jnp.stack(per_assign, axis=0), axis=0)
    return y, jnp.mean(best).reshape(1)


if __name__ == "__main__":
    key = jax.random.PRNGKey(0)
    k_mix, k_w1, k_w2 = jax.random.split(key, 3)

    mix = jax.random.normal(k_mix, (N_BATCH, T), dtype=jnp.float32)

    # deterministic separator parameters (2nd layer stored pre-fused as (H, N_SRC*T))
    w1 = 0.05 * jax.random.normal(k_w1, (T, HIDDEN), dtype=jnp.float32)
    b1 = jnp.zeros((1, HIDDEN), dtype=jnp.float32)
    w2 = 0.05 * jax.random.normal(k_w2, (HIDDEN, N_SRC * T), dtype=jnp.float32)
    b2 = jnp.zeros((1, N_SRC * T), dtype=jnp.float32)

    y, loss = mixit_loss_forward(mix, w1, b1, w2, b2)
    jax.block_until_ready((y, loss))

    y_ref, loss_ref = _reference(mix, w1, b1, w2, b2)
    assert y.shape == (N_BATCH // 2, N_SRC, T), y.shape
    assert loss.shape == (1,), loss.shape
    assert jnp.allclose(y, y_ref, atol=1e-4, rtol=1e-4), "y mismatch"
    assert jnp.allclose(loss, loss_ref, atol=5e-5, rtol=1e-4), "loss mismatch"

    print("KERNEL_OK")
</pallas_src>

<mosaic_0001>
module attributes {stable_mosaic.version = 11 : i64} {
  func.func @_mixit_kernel(%arg0: i32, %arg1: memref<8x256xf32, #tpu.memory_space<vmem>>, %arg2: memref<8x256xf32, #tpu.memory_space<vmem>>, %arg3: memref<256x128xf32, #tpu.memory_space<vmem>>, %arg4: memref<1x128xf32, #tpu.memory_space<vmem>>, %arg5: memref<128x1024xf32, #tpu.memory_space<vmem>>, %arg6: memref<1x1024xf32, #tpu.memory_space<vmem>>, %arg7: memref<8x1024xf32, #tpu.memory_space<vmem>>, %arg8: memref<8x1xf32, #tpu.memory_space<vmem>>) attributes {dimension_semantics = [#tpu.dimension_semantics<parallel>], iteration_bounds = array<i64: 2>, scalar_prefetch = 0 : i64, scratch_operands = 0 : i64, tpu.core_type = #tpu.core_type<tc>, window_params = [{transform_indices = @transform_0, window_bounds = array<i64: 8, 256>}, {transform_indices = @transform_1, window_bounds = array<i64: 8, 256>}, {pipeline_mode = #tpu.pipeline_mode<synchronous>, transform_indices = @transform_2, window_bounds = array<i64: 256, 128>}, {pipeline_mode = #tpu.pipeline_mode<synchronous>, transform_indices = @transform_3, window_bounds = array<i64: 1, 128>}, {pipeline_mode = #tpu.pipeline_mode<synchronous>, transform_indices = @transform_4, window_bounds = array<i64: 128, 1024>}, {pipeline_mode = #tpu.pipeline_mode<synchronous>, transform_indices = @transform_5, window_bounds = array<i64: 1, 1024>}, {transform_indices = @transform_6, window_bounds = array<i64: 8, 1024>}, {transform_indices = @transform_7, window_bounds = array<i64: 8, 1>}]} {
    %c0 = arith.constant 0 : index
    %c0_0 = arith.constant 0 : index
    %0 = vector.load %arg1[%c0, %c0_0] : memref<8x256xf32, #tpu.memory_space<vmem>>, vector<8x256xf32>
    %c0_1 = arith.constant 0 : index
    %c0_2 = arith.constant 0 : index
    %1 = vector.load %arg2[%c0_1, %c0_2] : memref<8x256xf32, #tpu.memory_space<vmem>>, vector<8x256xf32>
    %2 = arith.addf %0, %1 : vector<8x256xf32>
    %c0_3 = arith.constant 0 : index
    %c0_4 = arith.constant 0 : index
    %3 = vector.load %arg3[%c0_3, %c0_4] : memref<256x128xf32, #tpu.memory_space<vmem>>, vector<256x128xf32>
    %cst = arith.constant dense<0.000000e+00> : vector<8x128xf32>
    %4 = tpu.matmul %2, %3, %cst {dimension_numbers = #tpu.dot_dimension_numbers<[1], [0], [0], [1], [0, 0, 1, 1], [], []>} : vector<8x256xf32>, vector<256x128xf32>, vector<8x128xf32> -> vector<8x128xf32>
    %c0_5 = arith.constant 0 : index
    %c0_6 = arith.constant 0 : index
    %5 = vector.load %arg4[%c0_5, %c0_6] : memref<1x128xf32, #tpu.memory_space<vmem>>, vector<1x128xf32>
    %6 = vector.broadcast %5 : vector<1x128xf32> to vector<8x128xf32>
    %7 = arith.addf %4, %6 : vector<8x128xf32>
    %cst_7 = arith.constant 0.000000e+00 : f32
    %8 = vector.broadcast %cst_7 : f32 to vector<8x128xf32>
    %9 = arith.maximumf %7, %8 : vector<8x128xf32>
    %c0_8 = arith.constant 0 : index
    %c0_9 = arith.constant 0 : index
    %10 = vector.load %arg5[%c0_8, %c0_9] : memref<128x1024xf32, #tpu.memory_space<vmem>>, vector<128x1024xf32>
    %cst_10 = arith.constant dense<0.000000e+00> : vector<8x1024xf32>
    %11 = tpu.matmul %9, %10, %cst_10 {dimension_numbers = #tpu.dot_dimension_numbers<[1], [0], [0], [1], [0, 0, 1, 1], [], []>} : vector<8x128xf32>, vector<128x1024xf32>, vector<8x1024xf32> -> vector<8x1024xf32>
    %c0_11 = arith.constant 0 : index
    %c0_12 = arith.constant 0 : index
    %12 = vector.load %arg6[%c0_11, %c0_12] : memref<1x1024xf32, #tpu.memory_space<vmem>>, vector<1x1024xf32>
    %13 = vector.broadcast %12 : vector<1x1024xf32> to vector<8x1024xf32>
    %14 = arith.addf %11, %13 : vector<8x1024xf32>
    %15 = vector.extract_strided_slice %14 {offsets = [0, 0], sizes = [8, 256], strides = [1, 1]} : vector<8x1024xf32> to vector<8x256xf32>
    %16 = vector.extract_strided_slice %14 {offsets = [0, 256], sizes = [8, 256], strides = [1, 1]} : vector<8x1024xf32> to vector<8x256xf32>
    %17 = vector.extract_strided_slice %14 {offsets = [0, 512], sizes = [8, 256], strides = [1, 1]} : vector<8x1024xf32> to vector<8x256xf32>
    %18 = vector.extract_strided_slice %14 {offsets = [0, 768], sizes = [8, 256], strides = [1, 1]} : vector<8x1024xf32> to vector<8x256xf32>
    %19 = arith.maximumf %15, %16 : vector<8x256xf32>
    %20 = arith.maximumf %19, %17 : vector<8x256xf32>
    %21 = arith.maximumf %20, %18 : vector<8x256xf32>
    %22 = arith.subf %15, %21 : vector<8x256xf32>
    %23 = math.exp %22 : vector<8x256xf32>
    %24 = arith.subf %16, %21 : vector<8x256xf32>
    %25 = math.exp %24 : vector<8x256xf32>
    %26 = arith.subf %17, %21 : vector<8x256xf32>
    %27 = math.exp %26 : vector<8x256xf32>
    %28 = arith.subf %18, %21 : vector<8x256xf32>
    %29 = math.exp %28 : vector<8x256xf32>
    %30 = arith.addf %23, %25 : vector<8x256xf32>
    %31 = arith.addf %30, %27 : vector<8x256xf32>
    %32 = arith.addf %31, %29 : vector<8x256xf32>
    %33 = tpu.reciprocal %32 : vector<8x256xf32> -> vector<8x256xf32>
    %34 = arith.mulf %33, %2 : vector<8x256xf32>
    %35 = arith.mulf %23, %34 : vector<8x256xf32>
    %36 = arith.mulf %25, %34 : vector<8x256xf32>
    %37 = arith.mulf %27, %34 : vector<8x256xf32>
    %38 = arith.mulf %29, %34 : vector<8x256xf32>
    %39 = tpu.concatenate %35, %36, %37, %38 in 1 : vector<8x256xf32>, vector<8x256xf32>, vector<8x256xf32>, vector<8x256xf32> -> vector<8x1024xf32>
    %c0_13 = arith.constant 0 : index
    %c0_14 = arith.constant 0 : index
    %40 = vector.load %arg7[%c0_13, %c0_14] : memref<8x1024xf32, #tpu.memory_space<vmem>>, vector<8x1024xf32>
    tpu.vector_store %arg7[%c0_13, %c0_14], %39 {strides = array<i32>} : memref<8x1024xf32, #tpu.memory_space<vmem>>, vector<8x1024xf32>,
    %41 = arith.mulf %35, %35 : vector<8x256xf32>
    %cst_15 = arith.constant dense<0.000000e+00> : vector<8xf32>
    %42 = vector.multi_reduction <add>, %41, %cst_15 [1] : vector<8x256xf32> to vector<8xf32>
    %43 = vector.shape_cast %42 : vector<8xf32> to vector<8x1xf32>
    %44 = arith.mulf %35, %36 : vector<8x256xf32>
    %cst_16 = arith.constant dense<0.000000e+00> : vector<8xf32>
    %45 = vector.multi_reduction <add>, %44, %cst_16 [1] : vector<8x256xf32> to vector<8xf32>
    %46 = vector.shape_cast %45 : vector<8xf32> to vector<8x1xf32>
    %47 = arith.mulf %35, %37 : vector<8x256xf32>
    %cst_17 = arith.constant dense<0.000000e+00> : vector<8xf32>
    %48 = vector.multi_reduction <add>, %47, %cst_17 [1] : vector<8x256xf32> to vector<8xf32>
    %49 = vector.shape_cast %48 : vector<8xf32> to vector<8x1xf32>
    %50 = arith.mulf %35, %38 : vector<8x256xf32>
    %cst_18 = arith.constant dense<0.000000e+00> : vector<8xf32>
    %51 = vector.multi_reduction <add>, %50, %cst_18 [1] : vector<8x256xf32> to vector<8xf32>
    %52 = vector.shape_cast %51 : vector<8xf32> to vector<8x1xf32>
    %53 = arith.mulf %36, %36 : vector<8x256xf32>
    %cst_19 = arith.constant dense<0.000000e+00> : vector<8xf32>
    %54 = vector.multi_reduction <add>, %53, %cst_19 [1] : vector<8x256xf32> to vector<8xf32>
    %55 = vector.shape_cast %54 : vector<8xf32> to vector<8x1xf32>
    %56 = arith.mulf %36, %37 : vector<8x256xf32>
    %cst_20 = arith.constant dense<0.000000e+00> : vector<8xf32>
    %57 = vector.multi_reduction <add>, %56, %cst_20 [1] : vector<8x256xf32> to vector<8xf32>
    %58 = vector.shape_cast %57 : vector<8xf32> to vector<8x1xf32>
    %59 = arith.mulf %36, %38 : vector<8x256xf32>
    %cst_21 = arith.constant dense<0.000000e+00> : vector<8xf32>
    %60 = vector.multi_reduction <add>, %59, %cst_21 [1] : vector<8x256xf32> to vector<8xf32>
    %61 = vector.shape_cast %60 : vector<8xf32> to vector<8x1xf32>
    %62 = arith.mulf %37, %37 : vector<8x256xf32>
    %cst_22 = arith.constant dense<0.000000e+00> : vector<8xf32>
    %63 = vector.multi_reduction <add>, %62, %cst_22 [1] : vector<8x256xf32> to vector<8xf32>
    %64 = vector.shape_cast %63 : vector<8xf32> to vector<8x1xf32>
    %65 = arith.mulf %37, %38 : vector<8x256xf32>
    %cst_23 = arith.constant dense<0.000000e+00> : vector<8xf32>
    %66 = vector.multi_reduction <add>, %65, %cst_23 [1] : vector<8x256xf32> to vector<8xf32>
    %67 = vector.shape_cast %66 : vector<8xf32> to vector<8x1xf32>
    %68 = arith.mulf %38, %38 : vector<8x256xf32>
    %cst_24 = arith.constant dense<0.000000e+00> : vector<8xf32>
    %69 = vector.multi_reduction <add>, %68, %cst_24 [1] : vector<8x256xf32> to vector<8xf32>
    %70 = vector.shape_cast %69 : vector<8xf32> to vector<8x1xf32>
    %71 = arith.mulf %35, %0 : vector<8x256xf32>
    %cst_25 = arith.constant dense<0.000000e+00> : vector<8xf32>
    %72 = vector.multi_reduction <add>, %71, %cst_25 [1] : vector<8x256xf32> to vector<8xf32>
    %73 = vector.shape_cast %72 : vector<8xf32> to vector<8x1xf32>
    %74 = arith.mulf %36, %0 : vector<8x256xf32>
    %cst_26 = arith.constant dense<0.000000e+00> : vector<8xf32>
    %75 = vector.multi_reduction <add>, %74, %cst_26 [1] : vector<8x256xf32> to vector<8xf32>
    %76 = vector.shape_cast %75 : vector<8xf32> to vector<8x1xf32>
    %77 = arith.mulf %37, %0 : vector<8x256xf32>
    %cst_27 = arith.constant dense<0.000000e+00> : vector<8xf32>
    %78 = vector.multi_reduction <add>, %77, %cst_27 [1] : vector<8x256xf32> to vector<8xf32>
    %79 = vector.shape_cast %78 : vector<8xf32> to vector<8x1xf32>
    %80 = arith.mulf %38, %0 : vector<8x256xf32>
    %cst_28 = arith.constant dense<0.000000e+00> : vector<8xf32>
    %81 = vector.multi_reduction <add>, %80, %cst_28 [1] : vector<8x256xf32> to vector<8xf32>
    %82 = vector.shape_cast %81 : vector<8xf32> to vector<8x1xf32>
    %83 = arith.mulf %35, %1 : vector<8x256xf32>
    %cst_29 = arith.constant dense<0.000000e+00> : vector<8xf32>
    %84 = vector.multi_reduction <add>, %83, %cst_29 [1] : vector<8x256xf32> to vector<8xf32>
    %85 = vector.shape_cast %84 : vector<8xf32> to vector<8x1xf32>
    %86 = arith.mulf %36, %1 : vector<8x256xf32>
    %cst_30 = arith.constant dense<0.000000e+00> : vector<8xf32>
    %87 = vector.multi_reduction <add>, %86, %cst_30 [1] : vector<8x256xf32> to vector<8xf32>
    %88 = vector.shape_cast %87 : vector<8xf32> to vector<8x1xf32>
    %89 = arith.mulf %37, %1 : vector<8x256xf32>
    %cst_31 = arith.constant dense<0.000000e+00> : vector<8xf32>
    %90 = vector.multi_reduction <add>, %89, %cst_31 [1] : vector<8x256xf32> to vector<8xf32>
    %91 = vector.shape_cast %90 : vector<8xf32> to vector<8x1xf32>
    %92 = arith.mulf %38, %1 : vector<8x256xf32>
    %cst_32 = arith.constant dense<0.000000e+00> : vector<8xf32>
    %93 = vector.multi_reduction <add>, %92, %cst_32 [1] : vector<8x256xf32> to vector<8xf32>
    %94 = vector.shape_cast %93 : vector<8xf32> to vector<8x1xf32>
    %95 = arith.mulf %0, %0 : vector<8x256xf32>
    %cst_33 = arith.constant dense<0.000000e+00> : vector<8xf32>
    %96 = vector.multi_reduction <add>, %95, %cst_33 [1] : vector<8x256xf32> to vector<8xf32>
    %97 = vector.shape_cast %96 : vector<8xf32> to vector<8x1xf32>
    %98 = arith.mulf %1, %1 : vector<8x256xf32>
    %cst_34 = arith.constant dense<0.000000e+00> : vector<8xf32>
    %99 = vector.multi_reduction <add>, %98, %cst_34 [1] : vector<8x256xf32> to vector<8xf32>
    %100 = vector.shape_cast %99 : vector<8xf32> to vector<8x1xf32>
    %101 = arith.addf %97, %100 : vector<8x1xf32>
    %102 = arith.addf %101, %43 : vector<8x1xf32>
    %103 = arith.addf %102, %55 : vector<8x1xf32>
    %104 = arith.addf %103, %64 : vector<8x1xf32>
    %105 = arith.addf %104, %70 : vector<8x1xf32>
    %cst_35 = arith.constant 2.000000e+00 : f32
    %106 = vector.broadcast %cst_35 : f32 to vector<8x1xf32>
    %107 = arith.mulf %106, %85 : vector<8x1xf32>
    %108 = arith.subf %105, %107 : vector<8x1xf32>
    %cst_36 = arith.constant 2.000000e+00 : f32
    %109 = vector.broadcast %cst_36 : f32 to vector<8x1xf32>
    %110 = arith.mulf %109, %46 : vector<8x1xf32>
    %111 = arith.addf %108, %110 : vector<8x1xf32>
    %cst_37 = arith.constant 2.000000e+00 : f32
    %112 = vector.broadcast %cst_37 : f32 to vector<8x1xf32>
    %113 = arith.mulf %112, %49 : vector<8x1xf32>
    %114 = arith.addf %111, %113 : vector<8x1xf32>
    %cst_38 = arith.constant 2.000000e+00 : f32
    %115 = vector.broadcast %cst_38 : f32 to vector<8x1xf32>
    %116 = arith.mulf %115, %52 : vector<8x1xf32>
    %117 = arith.addf %114, %116 : vector<8x1xf32>
    %cst_39 = arith.constant 2.000000e+00 : f32
    %118 = vector.broadcast %cst_39 : f32 to vector<8x1xf32>
    %119 = arith.mulf %118, %88 : vector<8x1xf32>
    %120 = arith.subf %117, %119 : vector<8x1xf32>
    %cst_40 = arith.constant 2.000000e+00 : f32
    %121 = vector.broadcast %cst_40 : f32 to vector<8x1xf32>
    %122 = arith.mulf %121, %58 : vector<8x1xf32>
    %123 = arith.addf %120, %122 : vector<8x1xf32>
    %cst_41 = arith.constant 2.000000e+00 : f32
    %124 = vector.broadcast %cst_41 : f32 to vector<8x1xf32>
    %125 = arith.mulf %124, %61 : vector<8x1xf32>
    %126 = arith.addf %123, %125 : vector<8x1xf32>
    %cst_42 = arith.constant 2.000000e+00 : f32
    %127 = vector.broadcast %cst_42 : f32 to vector<8x1xf32>
    %128 = arith.mulf %127, %91 : vector<8x1xf32>
    %129 = arith.subf %126, %128 : vector<8x1xf32>
    %cst_43 = arith.constant 2.000000e+00 : f32
    %130 = vector.broadcast %cst_43 : f32 to vector<8x1xf32>
    %131 = arith.mulf %130, %67 : vector<8x1xf32>
    %132 = arith.addf %129, %131 : vector<8x1xf32>
    %cst_44 = arith.constant 2.000000e+00 : f32
    %133 = vector.broadcast %cst_44 : f32 to vector<8x1xf32>
    %134 = arith.mulf %133, %94 : vector<8x1xf32>
    %135 = arith.subf %132, %134 : vector<8x1xf32>
    %cst_45 = arith.constant 2.000000e+00 : f32
    %136 = vector.broadcast %cst_45 : f32 to vector<8x1xf32>
    %137 = arith.mulf %136, %73 : vector<8x1xf32>
    %138 = arith.subf %105, %137 : vector<8x1xf32>
    %cst_46 = arith.constant 2.000000e+00 : f32
    %139 = vector.broadcast %cst_46 : f32 to vector<8x1xf32>
    %140 = arith.mulf %139, %88 : vector<8x1xf32>
    %141 = arith.subf %138, %140 : vector<8x1xf32>
    %cst_47 = arith.constant 2.000000e+00 : f32
    %142 = vector.broadcast %cst_47 : f32 to vector<8x1xf32>
    %143 = arith.mulf %142, %58 : vector<8x1xf32>
    %144 = arith.addf %141, %143 : vector<8x1xf32>
    %cst_48 = arith.constant 2.000000e+00 : f32
    %145 = vector.broadcast %cst_48 : f32 to vector<8x1xf32>
    %146 = arith.mulf %145, %61 : vector<8x1xf32>
    %147 = arith.addf %144, %146 : vector<8x1xf32>
    %cst_49 = arith.constant 2.000000e+00 : f32
    %148 = vector.broadcast %cst_49 : f32 to vector<8x1xf32>
    %149 = arith.mulf %148, %91 : vector<8x1xf32>
    %150 = arith.subf %147, %149 : vector<8x1xf32>
    %cst_50 = arith.constant 2.000000e+00 : f32
    %151 = vector.broadcast %cst_50 : f32 to vector<8x1xf32>
    %152 = arith.mulf %151, %67 : vector<8x1xf32>
    %153 = arith.addf %150, %152 : vector<8x1xf32>
    %cst_51 = arith.constant 2.000000e+00 : f32
    %154 = vector.broadcast %cst_51 : f32 to vector<8x1xf32>
    %155 = arith.mulf %154, %94 : vector<8x1xf32>
    %156 = arith.subf %153, %155 : vector<8x1xf32>
    %157 = arith.minimumf %135, %156 : vector<8x1xf32>
    %cst_52 = arith.constant 2.000000e+00 : f32
    %158 = vector.broadcast %cst_52 : f32 to vector<8x1xf32>
    %159 = arith.mulf %158, %85 : vector<8x1xf32>
    %160 = arith.subf %105, %159 : vector<8x1xf32>
    %cst_53 = arith.constant 2.000000e+00 : f32
    %161 = vector.broadcast %cst_53 : f32 to vector<8x1xf32>
    %162 = arith.mulf %161, %49 : vector<8x1xf32>
    %163 = arith.addf %160, %162 : vector<8x1xf32>
    %cst_54 = arith.constant 2.000000e+00 : f32
    %164 = vector.broadcast %cst_54 : f32 to vector<8x1xf32>
    %165 = arith.mulf %164, %52 : vector<8x1xf32>
    %166 = arith.addf %163, %165 : vector<8x1xf32>
    %cst_55 = arith.constant 2.000000e+00 : f32
    %167 = vector.broadcast %cst_55 : f32 to vector<8x1xf32>
    %168 = arith.mulf %167, %76 : vector<8x1xf32>
    %169 = arith.subf %166, %168 : vector<8x1xf32>
    %cst_56 = arith.constant 2.000000e+00 : f32
    %170 = vector.broadcast %cst_56 : f32 to vector<8x1xf32>
    %171 = arith.mulf %170, %91 : vector<8x1xf32>
    %172 = arith.subf %169, %171 : vector<8x1xf32>
    %cst_57 = arith.constant 2.000000e+00 : f32
    %173 = vector.broadcast %cst_57 : f32 to vector<8x1xf32>
    %174 = arith.mulf %173, %67 : vector<8x1xf32>
    %175 = arith.addf %172, %174 : vector<8x1xf32>
    %cst_58 = arith.constant 2.000000e+00 : f32
    %176 = vector.broadcast %cst_58 : f32 to vector<8x1xf32>
    %177 = arith.mulf %176, %94 : vector<8x1xf32>
    %178 = arith.subf %175, %177 : vector<8x1xf32>
    %179 = arith.minimumf %157, %178 : vector<8x1xf32>
    %cst_59 = arith.constant 2.000000e+00 : f32
    %180 = vector.broadcast %cst_59 : f32 to vector<8x1xf32>
    %181 = arith.mulf %180, %73 : vector<8x1xf32>
    %182 = arith.subf %105, %181 : vector<8x1xf32>
    %cst_60 = arith.constant 2.000000e+00 : f32
    %183 = vector.broadcast %cst_60 : f32 to vector<8x1xf32>
    %184 = arith.mulf %183, %46 : vector<8x1xf32>
    %185 = arith.addf %182, %184 : vector<8x1xf32>
    %cst_61 = arith.constant 2.000000e+00 : f32
    %186 = vector.broadcast %cst_61 : f32 to vector<8x1xf32>
    %187 = arith.mulf %186, %76 : vector<8x1xf32>
    %188 = arith.subf %185, %187 : vector<8x1xf32>
    %cst_62 = arith.constant 2.000000e+00 : f32
    %189 = vector.broadcast %cst_62 : f32 to vector<8x1xf32>
    %190 = arith.mulf %189, %91 : vector<8x1xf32>
    %191 = arith.subf %188, %190 : vector<8x1xf32>
    %cst_63 = arith.constant 2.000000e+00 : f32
    %192 = vector.broadcast %cst_63 : f32 to vector<8x1xf32>
    %193 = arith.mulf %192, %67 : vector<8x1xf32>
    %194 = arith.addf %191, %193 : vector<8x1xf32>
    %cst_64 = arith.constant 2.000000e+00 : f32
    %195 = vector.broadcast %cst_64 : f32 to vector<8x1xf32>
    %196 = arith.mulf %195, %94 : vector<8x1xf32>
    %197 = arith.subf %194, %196 : vector<8x1xf32>
    %198 = arith.minimumf %179, %197 : vector<8x1xf32>
    %cst_65 = arith.constant 2.000000e+00 : f32
    %199 = vector.broadcast %cst_65 : f32 to vector<8x1xf32>
    %200 = arith.mulf %199, %85 : vector<8x1xf32>
    %201 = arith.subf %105, %200 : vector<8x1xf32>
    %cst_66 = arith.constant 2.000000e+00 : f32
    %202 = vector.broadcast %cst_66 : f32 to vector<8x1xf32>
    %203 = arith.mulf %202, %46 : vector<8x1xf32>
    %204 = arith.addf %201, %203 : vector<8x1xf32>
    %cst_67 = arith.constant 2.000000e+00 : f32
    %205 = vector.broadcast %cst_67 : f32 to vector<8x1xf32>
    %206 = arith.mulf %205, %52 : vector<8x1xf32>
    %207 = arith.addf %204, %206 : vector<8x1xf32>
    %cst_68 = arith.constant 2.000000e+00 : f32
    %208 = vector.broadcast %cst_68 : f32 to vector<8x1xf32>
    %209 = arith.mulf %208, %88 : vector<8x1xf32>
    %210 = arith.subf %207, %209 : vector<8x1xf32>
    %cst_69 = arith.constant 2.000000e+00 : f32
    %211 = vector.broadcast %cst_69 : f32 to vector<8x1xf32>
    %212 = arith.mulf %211, %61 : vector<8x1xf32>
    %213 = arith.addf %210, %212 : vector<8x1xf32>
    %cst_70 = arith.constant 2.000000e+00 : f32
    %214 = vector.broadcast %cst_70 : f32 to vector<8x1xf32>
    %215 = arith.mulf %214, %79 : vector<8x1xf32>
    %216 = arith.subf %213, %215 : vector<8x1xf32>
    %cst_71 = arith.constant 2.000000e+00 : f32
    %217 = vector.broadcast %cst_71 : f32 to vector<8x1xf32>
    %218 = arith.mulf %217, %94 : vector<8x1xf32>
    %219 = arith.subf %216, %218 : vector<8x1xf32>
    %220 = arith.minimumf %198, %219 : vector<8x1xf32>
    %cst_72 = arith.constant 2.000000e+00 : f32
    %221 = vector.broadcast %cst_72 : f32 to vector<8x1xf32>
    %222 = arith.mulf %221, %73 : vector<8x1xf32>
    %223 = arith.subf %105, %222 : vector<8x1xf32>
    %cst_73 = arith.constant 2.000000e+00 : f32
    %224 = vector.broadcast %cst_73 : f32 to vector<8x1xf32>
    %225 = arith.mulf %224, %49 : vector<8x1xf32>
    %226 = arith.addf %223, %225 : vector<8x1xf32>
    %cst_74 = arith.constant 2.000000e+00 : f32
    %227 = vector.broadcast %cst_74 : f32 to vector<8x1xf32>
    %228 = arith.mulf %227, %88 : vector<8x1xf32>
    %229 = arith.subf %226, %228 : vector<8x1xf32>
    %cst_75 = arith.constant 2.000000e+00 : f32
    %230 = vector.broadcast %cst_75 : f32 to vector<8x1xf32>
    %231 = arith.mulf %230, %61 : vector<8x1xf32>
    %232 = arith.addf %229, %231 : vector<8x1xf32>
    %cst_76 = arith.constant 2.000000e+00 : f32
    %233 = vector.broadcast %cst_76 : f32 to vector<8x1xf32>
    %234 = arith.mulf %233, %79 : vector<8x1xf32>
    %235 = arith.subf %232, %234 : vector<8x1xf32>
    %cst_77 = arith.constant 2.000000e+00 : f32
    %236 = vector.broadcast %cst_77 : f32 to vector<8x1xf32>
    %237 = arith.mulf %236, %94 : vector<8x1xf32>
    %238 = arith.subf %235, %237 : vector<8x1xf32>
    %239 = arith.minimumf %220, %238 : vector<8x1xf32>
    %cst_78 = arith.constant 2.000000e+00 : f32
    %240 = vector.broadcast %cst_78 : f32 to vector<8x1xf32>
    %241 = arith.mulf %240, %85 : vector<8x1xf32>
    %242 = arith.subf %105, %241 : vector<8x1xf32>
    %cst_79 = arith.constant 2.000000e+00 : f32
    %243 = vector.broadcast %cst_79 : f32 to vector<8x1xf32>
    %244 = arith.mulf %243, %52 : vector<8x1xf32>
    %245 = arith.addf %242, %244 : vector<8x1xf32>
    %cst_80 = arith.constant 2.000000e+00 : f32
    %246 = vector.broadcast %cst_80 : f32 to vector<8x1xf32>
    %247 = arith.mulf %246, %76 : vector<8x1xf32>
    %248 = arith.subf %245, %247 : vector<8x1xf32>
    %cst_81 = arith.constant 2.000000e+00 : f32
    %249 = vector.broadcast %cst_81 : f32 to vector<8x1xf32>
    %250 = arith.mulf %249, %58 : vector<8x1xf32>
    %251 = arith.addf %248, %250 : vector<8x1xf32>
    %cst_82 = arith.constant 2.000000e+00 : f32
    %252 = vector.broadcast %cst_82 : f32 to vector<8x1xf32>
    %253 = arith.mulf %252, %79 : vector<8x1xf32>
    %254 = arith.subf %251, %253 : vector<8x1xf32>
    %cst_83 = arith.constant 2.000000e+00 : f32
    %255 = vector.broadcast %cst_83 : f32 to vector<8x1xf32>
    %256 = arith.mulf %255, %94 : vector<8x1xf32>
    %257 = arith.subf %254, %256 : vector<8x1xf32>
    %258 = arith.minimumf %239, %257 : vector<8x1xf32>
    %cst_84 = arith.constant 2.000000e+00 : f32
    %259 = vector.broadcast %cst_84 : f32 to vector<8x1xf32>
    %260 = arith.mulf %259, %73 : vector<8x1xf32>
    %261 = arith.subf %105, %260 : vector<8x1xf32>
    %cst_85 = arith.constant 2.000000e+00 : f32
    %262 = vector.broadcast %cst_85 : f32 to vector<8x1xf32>
    %263 = arith.mulf %262, %46 : vector<8x1xf32>
    %264 = arith.addf %261, %263 : vector<8x1xf32>
    %cst_86 = arith.constant 2.000000e+00 : f32
    %265 = vector.broadcast %cst_86 : f32 to vector<8x1xf32>
    %266 = arith.mulf %265, %49 : vector<8x1xf32>
    %267 = arith.addf %264, %266 : vector<8x1xf32>
    %cst_87 = arith.constant 2.000000e+00 : f32
    %268 = vector.broadcast %cst_87 : f32 to vector<8x1xf32>
    %269 = arith.mulf %268, %76 : vector<8x1xf32>
    %270 = arith.subf %267, %269 : vector<8x1xf32>
    %cst_88 = arith.constant 2.000000e+00 : f32
    %271 = vector.broadcast %cst_88 : f32 to vector<8x1xf32>
    %272 = arith.mulf %271, %58 : vector<8x1xf32>
    %273 = arith.addf %270, %272 : vector<8x1xf32>
    %cst_89 = arith.constant 2.000000e+00 : f32
    %274 = vector.broadcast %cst_89 : f32 to vector<8x1xf32>
    %275 = arith.mulf %274, %79 : vector<8x1xf32>
    %276 = arith.subf %273, %275 : vector<8x1xf32>
    %cst_90 = arith.constant 2.000000e+00 : f32
    %277 = vector.broadcast %cst_90 : f32 to vector<8x1xf32>
    %278 = arith.mulf %277, %94 : vector<8x1xf32>
    %279 = arith.subf %276, %278 : vector<8x1xf32>
    %280 = arith.minimumf %258, %279 : vector<8x1xf32>
    %cst_91 = arith.constant 2.000000e+00 : f32
    %281 = vector.broadcast %cst_91 : f32 to vector<8x1xf32>
    %282 = arith.mulf %281, %85 : vector<8x1xf32>
    %283 = arith.subf %105, %282 : vector<8x1xf32>
    %cst_92 = arith.constant 2.000000e+00 : f32
    %284 = vector.broadcast %cst_92 : f32 to vector<8x1xf32>
    %285 = arith.mulf %284, %46 : vector<8x1xf32>
    %286 = arith.addf %283, %285 : vector<8x1xf32>
    %cst_93 = arith.constant 2.000000e+00 : f32
    %287 = vector.broadcast %cst_93 : f32 to vector<8x1xf32>
    %288 = arith.mulf %287, %49 : vector<8x1xf32>
    %289 = arith.addf %286, %288 : vector<8x1xf32>
    %cst_94 = arith.constant 2.000000e+00 : f32
    %290 = vector.broadcast %cst_94 : f32 to vector<8x1xf32>
    %291 = arith.mulf %290, %88 : vector<8x1xf32>
    %292 = arith.subf %289, %291 : vector<8x1xf32>
    %cst_95 = arith.constant 2.000000e+00 : f32
    %293 = vector.broadcast %cst_95 : f32 to vector<8x1xf32>
    %294 = arith.mulf %293, %58 : vector<8x1xf32>
    %295 = arith.addf %292, %294 : vector<8x1xf32>
    %cst_96 = arith.constant 2.000000e+00 : f32
    %296 = vector.broadcast %cst_96 : f32 to vector<8x1xf32>
    %297 = arith.mulf %296, %91 : vector<8x1xf32>
    %298 = arith.subf %295, %297 : vector<8x1xf32>
    %cst_97 = arith.constant 2.000000e+00 : f32
    %299 = vector.broadcast %cst_97 : f32 to vector<8x1xf32>
    %300 = arith.mulf %299, %82 : vector<8x1xf32>
    %301 = arith.subf %298, %300 : vector<8x1xf32>
    %302 = arith.minimumf %280, %301 : vector<8x1xf32>
    %cst_98 = arith.constant 2.000000e+00 : f32
    %303 = vector.broadcast %cst_98 : f32 to vector<8x1xf32>
    %304 = arith.mulf %303, %73 : vector<8x1xf32>
    %305 = arith.subf %105, %304 : vector<8x1xf32>
    %cst_99 = arith.constant 2.000000e+00 : f32
    %306 = vector.broadcast %cst_99 : f32 to vector<8x1xf32>
    %307 = arith.mulf %306, %52 : vector<8x1xf32>
    %308 = arith.addf %305, %307 : vector<8x1xf32>
    %cst_100 = arith.constant 2.000000e+00 : f32
    %309 = vector.broadcast %cst_100 : f32 to vector<8x1xf32>
    %310 = arith.mulf %309, %88 : vector<8x1xf32>
    %311 = arith.subf %308, %310 : vector<8x1xf32>
    %cst_101 = arith.constant 2.000000e+00 : f32
    %312 = vector.broadcast %cst_101 : f32 to vector<8x1xf32>
    %313 = arith.mulf %312, %58 : vector<8x1xf32>
    %314 = arith.addf %311, %313 : vector<8x1xf32>
    %cst_102 = arith.constant 2.000000e+00 : f32
    %315 = vector.broadcast %cst_102 : f32 to vector<8x1xf32>
    %316 = arith.mulf %315, %91 : vector<8x1xf32>
    %317 = arith.subf %314, %316 : vector<8x1xf32>
    %cst_103 = arith.constant 2.000000e+00 : f32
    %318 = vector.broadcast %cst_103 : f32 to vector<8x1xf32>
    %319 = arith.mulf %318, %82 : vector<8x1xf32>
    %320 = arith.subf %317, %319 : vector<8x1xf32>
    %321 = arith.minimumf %302, %320 : vector<8x1xf32>
    %cst_104 = arith.constant 2.000000e+00 : f32
    %322 = vector.broadcast %cst_104 : f32 to vector<8x1xf32>
    %323 = arith.mulf %322, %85 : vector<8x1xf32>
    %324 = arith.subf %105, %323 : vector<8x1xf32>
    %cst_105 = arith.constant 2.000000e+00 : f32
    %325 = vector.broadcast %cst_105 : f32 to vector<8x1xf32>
    %326 = arith.mulf %325, %49 : vector<8x1xf32>
    %327 = arith.addf %324, %326 : vector<8x1xf32>
    %cst_106 = arith.constant 2.000000e+00 : f32
    %328 = vector.broadcast %cst_106 : f32 to vector<8x1xf32>
    %329 = arith.mulf %328, %76 : vector<8x1xf32>
    %330 = arith.subf %327, %329 : vector<8x1xf32>
    %cst_107 = arith.constant 2.000000e+00 : f32
    %331 = vector.broadcast %cst_107 : f32 to vector<8x1xf32>
    %332 = arith.mulf %331, %61 : vector<8x1xf32>
    %333 = arith.addf %330, %332 : vector<8x1xf32>
    %cst_108 = arith.constant 2.000000e+00 : f32
    %334 = vector.broadcast %cst_108 : f32 to vector<8x1xf32>
    %335 = arith.mulf %334, %91 : vector<8x1xf32>
    %336 = arith.subf %333, %335 : vector<8x1xf32>
    %cst_109 = arith.constant 2.000000e+00 : f32
    %337 = vector.broadcast %cst_109 : f32 to vector<8x1xf32>
    %338 = arith.mulf %337, %82 : vector<8x1xf32>
    %339 = arith.subf %336, %338 : vector<8x1xf32>
    %340 = arith.minimumf %321, %339 : vector<8x1xf32>
    %cst_110 = arith.constant 2.000000e+00 : f32
    %341 = vector.broadcast %cst_110 : f32 to vector<8x1xf32>
    %342 = arith.mulf %341, %73 : vector<8x1xf32>
    %343 = arith.subf %105, %342 : vector<8x1xf32>
    %cst_111 = arith.constant 2.000000e+00 : f32
    %344 = vector.broadcast %cst_111 : f32 to vector<8x1xf32>
    %345 = arith.mulf %344, %46 : vector<8x1xf32>
    %346 = arith.addf %343, %345 : vector<8x1xf32>
    %cst_112 = arith.constant 2.000000e+00 : f32
    %347 = vector.broadcast %cst_112 : f32 to vector<8x1xf32>
    %348 = arith.mulf %347, %52 : vector<8x1xf32>
    %349 = arith.addf %346, %348 : vector<8x1xf32>
    %cst_113 = arith.constant 2.000000e+00 : f32
    %350 = vector.broadcast %cst_113 : f32 to vector<8x1xf32>
    %351 = arith.mulf %350, %76 : vector<8x1xf32>
    %352 = arith.subf %349, %351 : vector<8x1xf32>
    %cst_114 = arith.constant 2.000000e+00 : f32
    %353 = vector.broadcast %cst_114 : f32 to vector<8x1xf32>
    %354 = arith.mulf %353, %61 : vector<8x1xf32>
    %355 = arith.addf %352, %354 : vector<8x1xf32>
    %cst_115 = arith.constant 2.000000e+00 : f32
    %356 = vector.broadcast %cst_115 : f32 to vector<8x1xf32>
    %357 = arith.mulf %356, %91 : vector<8x1xf32>
    %358 = arith.subf %355, %357 : vector<8x1xf32>
    %cst_116 = arith.constant 2.000000e+00 : f32
    %359 = vector.broadcast %cst_116 : f32 to vector<8x1xf32>
    %360 = arith.mulf %359, %82 : vector<8x1xf32>
    %361 = arith.subf %358, %360 : vector<8x1xf32>
    %362 = arith.minimumf %340, %361 : vector<8x1xf32>
    %cst_117 = arith.constant 2.000000e+00 : f32
    %363 = vector.broadcast %cst_117 : f32 to vector<8x1xf32>
    %364 = arith.mulf %363, %85 : vector<8x1xf32>
    %365 = arith.subf %105, %364 : vector<8x1xf32>
    %cst_118 = arith.constant 2.000000e+00 : f32
    %366 = vector.broadcast %cst_118 : f32 to vector<8x1xf32>
    %367 = arith.mulf %366, %46 : vector<8x1xf32>
    %368 = arith.addf %365, %367 : vector<8x1xf32>
    %cst_119 = arith.constant 2.000000e+00 : f32
    %369 = vector.broadcast %cst_119 : f32 to vector<8x1xf32>
    %370 = arith.mulf %369, %88 : vector<8x1xf32>
    %371 = arith.subf %368, %370 : vector<8x1xf32>
    %cst_120 = arith.constant 2.000000e+00 : f32
    %372 = vector.broadcast %cst_120 : f32 to vector<8x1xf32>
    %373 = arith.mulf %372, %79 : vector<8x1xf32>
    %374 = arith.subf %371, %373 : vector<8x1xf32>
    %cst_121 = arith.constant 2.000000e+00 : f32
    %375 = vector.broadcast %cst_121 : f32 to vector<8x1xf32>
    %376 = arith.mulf %375, %67 : vector<8x1xf32>
    %377 = arith.addf %374, %376 : vector<8x1xf32>
    %cst_122 = arith.constant 2.000000e+00 : f32
    %378 = vector.broadcast %cst_122 : f32 to vector<8x1xf32>
    %379 = arith.mulf %378, %82 : vector<8x1xf32>
    %380 = arith.subf %377, %379 : vector<8x1xf32>
    %381 = arith.minimumf %362, %380 : vector<8x1xf32>
    %cst_123 = arith.constant 2.000000e+00 : f32
    %382 = vector.broadcast %cst_123 : f32 to vector<8x1xf32>
    %383 = arith.mulf %382, %73 : vector<8x1xf32>
    %384 = arith.subf %105, %383 : vector<8x1xf32>
    %cst_124 = arith.constant 2.000000e+00 : f32
    %385 = vector.broadcast %cst_124 : f32 to vector<8x1xf32>
    %386 = arith.mulf %385, %49 : vector<8x1xf32>
    %387 = arith.addf %384, %386 : vector<8x1xf32>
    %cst_125 = arith.constant 2.000000e+00 : f32
    %388 = vector.broadcast %cst_125 : f32 to vector<8x1xf32>
    %389 = arith.mulf %388, %52 : vector<8x1xf32>
    %390 = arith.addf %387, %389 : vector<8x1xf32>
    %cst_126 = arith.constant 2.000000e+00 : f32
    %391 = vector.broadcast %cst_126 : f32 to vector<8x1xf32>
    %392 = arith.mulf %391, %88 : vector<8x1xf32>
    %393 = arith.subf %390, %392 : vector<8x1xf32>
    %cst_127 = arith.constant 2.000000e+00 : f32
    %394 = vector.broadcast %cst_127 : f32 to vector<8x1xf32>
    %395 = arith.mulf %394, %79 : vector<8x1xf32>
    %396 = arith.subf %393, %395 : vector<8x1xf32>
    %cst_128 = arith.constant 2.000000e+00 : f32
    %397 = vector.broadcast %cst_128 : f32 to vector<8x1xf32>
    %398 = arith.mulf %397, %67 : vector<8x1xf32>
    %399 = arith.addf %396, %398 : vector<8x1xf32>
    %cst_129 = arith.constant 2.000000e+00 : f32
    %400 = vector.broadcast %cst_129 : f32 to vector<8x1xf32>
    %401 = arith.mulf %400, %82 : vector<8x1xf32>
    %402 = arith.subf %399, %401 : vector<8x1xf32>
    %403 = arith.minimumf %381, %402 : vector<8x1xf32>
    %cst_130 = arith.constant 2.000000e+00 : f32
    %404 = vector.broadcast %cst_130 : f32 to vector<8x1xf32>
    %405 = arith.mulf %404, %85 : vector<8x1xf32>
    %406 = arith.subf %105, %405 : vector<8x1xf32>
    %cst_131 = arith.constant 2.000000e+00 : f32
    %407 = vector.broadcast %cst_131 : f32 to vector<8x1xf32>
    %408 = arith.mulf %407, %76 : vector<8x1xf32>
    %409 = arith.subf %406, %408 : vector<8x1xf32>
    %cst_132 = arith.constant 2.000000e+00 : f32
    %410 = vector.broadcast %cst_132 : f32 to vector<8x1xf32>
    %411 = arith.mulf %410, %58 : vector<8x1xf32>
    %412 = arith.addf %409, %411 : vector<8x1xf32>
    %cst_133 = arith.constant 2.000000e+00 : f32
    %413 = vector.broadcast %cst_133 : f32 to vector<8x1xf32>
    %414 = arith.mulf %413, %61 : vector<8x1xf32>
    %415 = arith.addf %412, %414 : vector<8x1xf32>
    %cst_134 = arith.constant 2.000000e+00 : f32
    %416 = vector.broadcast %cst_134 : f32 to vector<8x1xf32>
    %417 = arith.mulf %416, %79 : vector<8x1xf32>
    %418 = arith.subf %415, %417 : vector<8x1xf32>
    %cst_135 = arith.constant 2.000000e+00 : f32
    %419 = vector.broadcast %cst_135 : f32 to vector<8x1xf32>
    %420 = arith.mulf %419, %67 : vector<8x1xf32>
    %421 = arith.addf %418, %420 : vector<8x1xf32>
    %cst_136 = arith.constant 2.000000e+00 : f32
    %422 = vector.broadcast %cst_136 : f32 to vector<8x1xf32>
    %423 = arith.mulf %422, %82 : vector<8x1xf32>
    %424 = arith.subf %421, %423 : vector<8x1xf32>
    %425 = arith.minimumf %403, %424 : vector<8x1xf32>
    %cst_137 = arith.constant 2.000000e+00 : f32
    %426 = vector.broadcast %cst_137 : f32 to vector<8x1xf32>
    %427 = arith.mulf %426, %73 : vector<8x1xf32>
    %428 = arith.subf %105, %427 : vector<8x1xf32>
    %cst_138 = arith.constant 2.000000e+00 : f32
    %429 = vector.broadcast %cst_138 : f32 to vector<8x1xf32>
    %430 = arith.mulf %429, %46 : vector<8x1xf32>
    %431 = arith.addf %428, %430 : vector<8x1xf32>
    %cst_139 = arith.constant 2.000000e+00 : f32
    %432 = vector.broadcast %cst_139 : f32 to vector<8x1xf32>
    %433 = arith.mulf %432, %49 : vector<8x1xf32>
    %434 = arith.addf %431, %433 : vector<8x1xf32>
    %cst_140 = arith.constant 2.000000e+00 : f32
    %435 = vector.broadcast %cst_140 : f32 to vector<8x1xf32>
    %436 = arith.mulf %435, %52 : vector<8x1xf32>
    %437 = arith.addf %434, %436 : vector<8x1xf32>
    %cst_141 = arith.constant 2.000000e+00 : f32
    %438 = vector.broadcast %cst_141 : f32 to vector<8x1xf32>
    %439 = arith.mulf %438, %76 : vector<8x1xf32>
    %440 = arith.subf %437, %439 : vector<8x1xf32>
    %cst_142 = arith.constant 2.000000e+00 : f32
    %441 = vector.broadcast %cst_142 : f32 to vector<8x1xf32>
    %442 = arith.mulf %441, %58 : vector<8x1xf32>
    %443 = arith.addf %440, %442 : vector<8x1xf32>
    %cst_143 = arith.constant 2.000000e+00 : f32
    %444 = vector.broadcast %cst_143 : f32 to vector<8x1xf32>
    %445 = arith.mulf %444, %61 : vector<8x1xf32>
    %446 = arith.addf %443, %445 : vector<8x1xf32>
    %cst_144 = arith.constant 2.000000e+00 : f32
    %447 = vector.broadcast %cst_144 : f32 to vector<8x1xf32>
    %448 = arith.mulf %447, %79 : vector<8x1xf32>
    %449 = arith.subf %446, %448 : vector<8x1xf32>
    %cst_145 = arith.constant 2.000000e+00 : f32
    %450 = vector.broadcast %cst_145 : f32 to vector<8x1xf32>
    %451 = arith.mulf %450, %67 : vector<8x1xf32>
    %452 = arith.addf %449, %451 : vector<8x1xf32>
    %cst_146 = arith.constant 2.000000e+00 : f32
    %453 = vector.broadcast %cst_146 : f32 to vector<8x1xf32>
    %454 = arith.mulf %453, %82 : vector<8x1xf32>
    %455 = arith.subf %452, %454 : vector<8x1xf32>
    %456 = arith.minimumf %425, %455 : vector<8x1xf32>
    %cst_147 = arith.constant 5.120000e+02 : f32
    %457 = vector.broadcast %cst_147 : f32 to vector<8x1xf32>
    %458 = arith.divf %456, %457 : vector<8x1xf32>
    %c0_148 = arith.constant 0 : index
    %c0_149 = arith.constant 0 : index
    %459 = vector.load %arg8[%c0_148, %c0_149] : memref<8x1xf32, #tpu.memory_space<vmem>>, vector<8x1xf32>
    tpu.vector_store %arg8[%c0_148, %c0_149], %458 {strides = array<i32>} : memref<8x1xf32, #tpu.memory_space<vmem>>, vector<8x1xf32>,
    return
  }
  func.func @transform_0(%arg0: i32) -> (i32, i32) {
    %c0_i32 = arith.constant 0 : i32
    %c0_i32_0 = arith.constant 0 : i32
    return %arg0, %c0_i32 : i32, i32
  }
  func.func @transform_1(%arg0: i32) -> (i32, i32) {
    %c2_i32 = arith.constant 2 : i32
    %0 = arith.addi %arg0, %c2_i32 : i32
    %c0_i32 = arith.constant 0 : i32
    %c0_i32_0 = arith.constant 0 : i32
    return %0, %c0_i32 : i32, i32
  }
  func.func @transform_2(%arg0: i32) -> (i32, i32) {
    %c0_i32 = arith.constant 0 : i32
    %c0_i32_0 = arith.constant 0 : i32
    %c0_i32_1 = arith.constant 0 : i32
    return %c0_i32, %c0_i32_0 : i32, i32
  }
  func.func @transform_3(%arg0: i32) -> (i32, i32) {
    %c0_i32 = arith.constant 0 : i32
    %c0_i32_0 = arith.constant 0 : i32
    %c0_i32_1 = arith.constant 0 : i32
    return %c0_i32, %c0_i32_0 : i32, i32
  }
  func.func @transform_4(%arg0: i32) -> (i32, i32) {
    %c0_i32 = arith.constant 0 : i32
    %c0_i32_0 = arith.constant 0 : i32
    %c0_i32_1 = arith.constant 0 : i32
    return %c0_i32, %c0_i32_0 : i32, i32
  }
  func.func @transform_5(%arg0: i32) -> (i32, i32) {
    %c0_i32 = arith.constant 0 : i32
    %c0_i32_0 = arith.constant 0 : i32
    %c0_i32_1 = arith.constant 0 : i32
    return %c0_i32, %c0_i32_0 : i32, i32
  }
  func.func @transform_6(%arg0: i32) -> (i32, i32) {
    %c0_i32 = arith.constant 0 : i32
    %c0_i32_0 = arith.constant 0 : i32
    return %arg0, %c0_i32 : i32, i32
  }
  func.func @transform_7(%arg0: i32) -> (i32, i32) {
    %c0_i32 = arith.constant 0 : i32
    %c0_i32_0 = arith.constant 0 : i32
    return %arg0, %c0_i32 : i32, i32
  }
}

</mosaic_0001>

<bundles_post_ra>
// kernel: tpu_custom_call.1
= control target key start
LH: loop header
LB: loop body
LE: loop exit
PB: predicated region body
PF: predicated region fallthrough
CT: control target
= control target key end

     0   :  { %s2531_s0 = inlined_call_operand.hbm [shape: f32[32,256], index: 0, kind: input, shape index: {}]   ;;  %s2532_s1 = inlined_call_operand.hbm [shape: f32[32,256], index: 1, kind: input, shape index: {}]   ;;  %s2533_s2 = inlined_call_operand.hbm [shape: f32[256,128], index: 2, kind: input, shape index: {}]   ;;  %s2534_s3 = inlined_call_operand.vmem [shape: f32[1,128], index: 3, kind: input, shape index: {}]   ;;  %s2535_s4 = inlined_call_operand.hbm [shape: f32[128,1024], index: 4, kind: input, shape index: {}]   ;;  %s2536_s5 = inlined_call_operand.vmem [shape: f32[1,1024], index: 5, kind: input, shape index: {}]   ;;  %s2537_s6 = inlined_call_operand.hbm [shape: f32[16,1024], index: 6, kind: output, shape index: {0}]   ;;  %s2538_s7 = inlined_call_operand.vmem [shape: f32[16,1], index: 7, kind: output, shape index: {1}]  }
   0x1   :  { %2548 = sst [smem:[#allocation20_spill]] %s2533_s2 }
   0x2   :  { %2549 = sst [smem:[#allocation21_spill]] %s2535_s4 }
   0x3   :  { %13 = vsyncpa [#allocation3], 0 }
   0x4   :  { %15 = vsyncpa [#allocation3 + $0x1], 0 }
   0x5   :  { %16 = vsyncpa [#allocation6], 0 }
   0x6   :  { %18 = vsyncpa [#allocation6 + $0x1], 0 }
   0x7   :  { %19 = vsyncpa [#allocation9], 0 }
   0x8   :  { %20 = vsyncpa [#allocation4], 0 }
   0x9   :  { %22 = vsyncpa [#allocation4 + $0x1], 0  ;;  %s2000_s24 = smov 0   ;;  %s2002_s25 = smov 0  }
   0xa   :  { %s2004_s26 = smov 0   ;;  %s2006_s27 = smov 0  }
   0xb   :  { %s2008_s28 = smov 0   ;;  %s2010_s29 = smov 0  }
   0xc   :  { %s2012_s30 = smov 0  }
   0xd LB: > { %2550 = sst [smem:[#allocation16_spill]] %s1936_s27  ;;  %s1950_s8 = smov [#allocation7]   ;;  %s1948_s30 = sphi %s2012_s30, %s2587_s30   ;;  %s1944_s29 = sphi %s2010_s29, %s2581_s29   ;;  %s1940_s28 = sphi %s2008_s28, %s2586_s28   ;;  %s1936_s27 = sphi %s2006_s27, %s2585_s27   ;;  %s1932_s26 = sphi %s2004_s26, %s2584_s26   ;;  %s1928_s25 = sphi %s2002_s25, %s2583_s25   ;;  %s1924_s24 = sphi %s2000_s24, %s2582_s24  }
   0xe   : > { %2551 = sst [smem:[#allocation17_spill]] %s1944_s29  ;;  %s235_s9 = sshll.u32 %s1950_s8, 4  ;;  %s2041_s9 = int_to_ptr.vmem [resolvable:$true] %s235_s9 }
   0xf   : > { %s2036_s10 = sadd.s32 4294967295, %s1948_s30   ;;  %p1389_p0 = scmp.ge.s32.totalorder %s1948_s30, 1 }
  0x10   : > { %p2543_p1 = scmp.eq.s32.totalorder %s2036_s10, 0  ;;  %p223_p2 = scmp.lt.s32.totalorder %s1948_s30, 3 }
  0x11   : > { %s1951_s12 = smov [#allocation8]   ;;  %s2554_s2 = sld [smem:[#allocation20_spill]] }
  0x12   : > { %p2043_p3 = pnand %p1389_p0, %p223_p2  ;;  %s251_s13 = sshll.u32 %s1951_s12, 4  ;;  %s2056_s13 = int_to_ptr.vmem [resolvable:$true] %s251_s13 }
  0x14   : > { %p1622_p5 = pneg %p2043_p3 }
  0x16   : > { %p2052_p6 = pnand %p1622_p5, %p2543_p1 }
  0x17   : > { %s1729_s17 = scalar_lea.hbm %s2554_s2, 4096 }
  0x18   : > { %p1730_p7 = scmp.ne.s32.totalorder %s2554_s2, %s1729_s17  ;;  %p1731_p8 = pneg %p2052_p6 }
  0x19   : > { %p1736_p11 = scmp.lt.u32.totalorder %s1729_s17, %s2554_s2 }
  0x1a   : > { %p1732_p9 = pnand %p1731_p8, %p1730_p7 }
  0x1c   : > { %p1733_p10 = pneg %p1732_p9 }
  0x1e   : > { %p1738_p12 = pnand %p1736_p11, %p1733_p10 }
  0x20   : > { %1741 = shalt.err (!%p1738_p12)
}
  0x21   : > { %s1742_s22 = scalar_lea.vmem %s2041_s9, 4096  ;;  %p1750_p5 = scmp.lt.s32.totalorder %s2041_s9, %s2041_s9 }
  0x22   : > { %p1743_p13 = scmp.ne.s32.totalorder %s2041_s9, %s1742_s22  ;;  %p1751_p7 = scmp.lt.s32.totalorder %s1742_s22, %s1742_s22 }
  0x24   : > { %p1745_p0 = pnand %p1743_p13, %p1731_p8  ;;  %p1752_p9 = por %p1751_p7, %p1750_p5 }
  0x26   : > { %p1746_p2 = pneg %p1745_p0 }
  0x28   : > { %p1753_p4 = pnand %p1752_p9, %p1746_p2 }
  0x2a   : > { %1756 = shalt.err (!%p1753_p4)
}
  0x2b   : > { %s1952_s23 = smov 128   ;;  %s1953_s8 = smov 8  }
  0x2c   : > { %1625 = dma.hbm_to_vmem [thread:$0]  (!%p2052_p6), %s2554_s2, 4096, %s2041_s9, [#allocation6], %s1952_s23, %s1952_s23, %s1953_s8  }
  0x2d   : > { %s2555_s4 = sld [smem:[#allocation21_spill]] }
  0x33   : > { %s1757_s18 = scalar_lea.hbm %s2555_s4, 16384 }
  0x34   : > { %p1758_p10 = scmp.ne.s32.totalorder %s2555_s4, %s1757_s18  ;;  %p1764_p12 = scmp.lt.u32.totalorder %s1757_s18, %s2555_s4 }
  0x36   : > { %p1760_p4 = pnand %p1758_p10, %p1731_p8 }
  0x38   : > { %p1761_p11 = pneg %p1760_p4 }
  0x3a   : > { %p1766_p13 = pnand %p1764_p12, %p1761_p11 }
  0x3c   : > { %1769 = shalt.err (!%p1766_p13)
}
  0x3d   : > { %s1770_s9 = scalar_lea.vmem %s2056_s13, 16384  ;;  %p1778_p7 = scmp.lt.s32.totalorder %s2056_s13, %s2056_s13 }
  0x3e   : > { %p1771_p0 = scmp.ne.s32.totalorder %s2056_s13, %s1770_s9  ;;  %p1779_p9 = scmp.lt.s32.totalorder %s1770_s9, %s1770_s9 }
  0x40   : > { %p1773_p2 = pnand %p1771_p0, %p1731_p8  ;;  %p1780_p10 = por %p1779_p9, %p1778_p7 }
  0x42   : > { %p1774_p5 = pneg %p1773_p2 }
  0x44   : > { %p1781_p4 = pnand %p1780_p10, %p1774_p5 }
  0x46   : > { %1784 = shalt.err (!%p1781_p4)
}
  0x47   : > { %s1954_s23 = smov 1024   ;;  %s1955_s8 = smov 64  }
  0x48   : > { %1628 = dma.hbm_to_vmem [thread:$0]  (!%p2052_p6), %s2555_s4, 16384, %s2056_s13, [#allocation9], %s1954_s23, %s1954_s23, %s1955_s8  }
  0x49   : > { %s1388_s16 = sadd.s32 4294967294, %s1948_s30   ;;  %s2112_s17 = sadd.s32 1, %s1948_s30  }
  0x4a   : > { %s32_s18 = ssub.s32 %s1948_s30, %s2112_s17  ;;  %s35_s19 = sadd.s32 1, %s1944_s29 }
  0x4b   : > { %p33_p8 = scmp.eq.s32.totalorder %s32_s18, 0  ;;  %p42_p11 = scmp.ne.s32.totalorder %s1944_s29, %s1940_s28 }
  0x4c   : > { %p2544_p12 = scmp.eq.s32.totalorder %s1948_s30, 0  ;;  %p48_p13 = scmp.ne.s32.totalorder %s1940_s28, %s1936_s27 }
  0x4d   : > { %s2123_s14 = scalar_select %p33_p8, %s1944_s29, %s35_s19  }
  0x4e   : > { %p2127_p0 = por %p2544_p12, %p42_p11  ;;  %p2133_p6 = por %p2543_p1, %p48_p13 }
  0x4f   : > { %2556 = sst [smem:[#allocation18_spill]] %s2123_s14  ;;  %p184_p2 = scmp.eq.s32.totalorder %s2036_s10, 1 }
  0x50   : > { %s2558_s13 = scalar_select %p2133_p6, 1, 0 }
  0x51   : > { %p190_p5 = scmp.eq.s32.totalorder %s1388_s16, 1  ;;  %p2542_p7 = scmp.lt.s32.totalorder %s1948_s30, 2 }
  0x52   : > { %p2140_p9 = por %p184_p2, %p42_p11  ;;  %s268_s9 = sand.u32 1, %s1944_s29  }
  0x53   : > { %p2145_p10 = por %p190_p5, %p48_p13  ;;  %s1393_s8 = sshll.u32 %s268_s9, 4 }
  0x54   : > { %s2559_s22 = scalar_select %p2140_p9, 1, 0 }
  0x55   : > { %s2560_s23 = scalar_select %p2145_p10, 1, 0 }
  0x56   : > { %s1411_s12 = sshll.u32 %s1948_s30, 8  ;;  %s272_s16 = scalar_lea.vmem [#allocation2], %s1393_s8 }
  0x57   : > { %2561 = sst [smem:[#allocation19_spill]] %s2560_s23  ;;  %s2153_s19 = scalar_lea.hbm %s2531_s0, %s1411_s12 }
  0x58   : > { %s280_s21 = sshll.u32 %s272_s16, 4  ;;  %p2159_p4 = pnand %p2542_p7, %p2127_p0  ;;  %s2163_s21 = int_to_ptr.vmem [resolvable:$true] %s280_s21 }
  0x59   : > { %s2168_s18 = scalar_lea.hbm %s2532_s1, %s1411_s12  ;;  %s269_s14 = scalar_lea.sflag [#allocation3], %s268_s9 }
  0x5a   : > { %s1785_s29 = scalar_lea.hbm %s2153_s19, 256  ;;  %p1787_p11 = pneg %p2159_p4 }
  0x5b   : > { %p1786_p8 = scmp.ne.s32.totalorder %s2153_s19, %s1785_s29  ;;  %s1790_s16 = scalar_lea.hbm %s2531_s0, 1024 }
  0x5c   : > { %p1791_p2 = scmp.lt.u32.totalorder %s2153_s19, %s2531_s0  ;;  %p1792_p5 = scmp.lt.u32.totalorder %s1790_s16, %s1785_s29 }
  0x5d   : > { %p1788_p13 = pnand %p1787_p11, %p1786_p8  ;;  %p1794_p1 = scmp.lt.u32.totalorder %s1785_s29, %s2153_s19 }
  0x5e   : > { %p1793_p7 = por %p1792_p5, %p1791_p2 }
  0x5f   : > { %p1789_p0 = pneg %p1788_p13 }
  0x60   : > { %p1795_p12 = por %p1794_p1, %p1793_p7 }
  0x62   : > { %p1796_p10 = pnand %p1795_p12, %p1789_p0 }
  0x64   : > { %1799 = shalt.err (!%p1796_p10)
}
  0x65   : > { %s1800_s4 = scalar_lea.vmem %s2163_s21, 256  ;;  %s1956_s9 = smov [#allocation2]  }
  0x66   : > { %p1801_p8 = scmp.ne.s32.totalorder %s2163_s21, %s1800_s4  ;;  %s1805_s12 = sshll.u32 %s1956_s9, 4  ;;  %s1806_s12 = int_to_ptr.vmem [resolvable:$false] %s1805_s12 }
  0x67   : > { %s1807_s27 = scalar_lea.vmem %s1806_s12, 512  ;;  %p1808_p6 = scmp.lt.s32.totalorder %s2163_s21, %s1806_s12 }
  0x68   : > { %p1803_p13 = pnand %p1801_p8, %p1787_p11  ;;  %p1809_p2 = scmp.lt.s32.totalorder %s1807_s27, %s1800_s4 }
  0x6a   : > { %p1804_p9 = pneg %p1803_p13  ;;  %p1810_p5 = por %p1809_p2, %p1808_p6 }
  0x6c   : > { %p1811_p1 = pnand %p1810_p5, %p1804_p9 }
  0x6e   : > { %1814 = shalt.err (!%p1811_p1)
}
  0x6f   : > { %1632 = dma.hbm_to_vmem [thread:$0]  (!%p2159_p4), %s2153_s19, 256, %s2163_s21, %s269_s14  }
  0x70   : > { %s58_s29 = sadd.s32 2, %s1948_s30  ;;  %s2563_s23 = sadd.s32 2, %s2112_s17 }
  0x71   : > { %s60_s2 = ssub.s32 %s58_s29, %s2563_s23  ;;  %s63_s15 = sadd.s32 1, %s1932_s26 }
  0x72   : > { %p61_p12 = scmp.eq.s32.totalorder %s60_s2, 0  ;;  %p70_p6 = scmp.ne.s32.totalorder %s1932_s26, %s1928_s25 }
  0x73   : > { %p76_p7 = scmp.ne.s32.totalorder %s1928_s25, %s1924_s24  ;;  %s287_s20 = sand.u32 1, %s1948_s30  }
  0x74   : > { %s2205_s8 = scalar_select %p61_p12, %s1932_s26, %s63_s15  }
  0x75   : > { %p2564_p9 = scmp.eq.s32.totalorder %s1948_s30, 0  ;;  %p2565_p11 = scmp.eq.s32.totalorder %s2036_s10, 0 }
  0x76   : > { %s289_s4 = sand.u32 1, %s1932_s26   ;;  %s2217_s21 = scalar_lea.hbm %s2168_s18, 512 }
  0x77   : > { %p72_p10 = por %p70_p6, %p2564_p9  ;;  %p2211_p0 = por %p76_p7, %p2565_p11 }
  0x78   : > { %s1396_s14 = sshll.u32 %s289_s4, 4  ;;  %p2567_p4 = scmp.lt.s32.totalorder %s1948_s30, 2 }
  0x79   : > { %s2566_s16 = scalar_select %p2211_p0, 1, 0 }
  0x7a   : > { %p2221_p8 = pnand %p2567_p4, %p72_p10  ;;  %s291_s19 = scalar_lea.vmem [#allocation5], %s1396_s14 }
  0x7b   : > { %s300_s9 = sshll.u32 %s291_s19, 4  ;;  %s288_s12 = scalar_lea.sflag [#allocation6], %s287_s20  ;;  %s2225_s9 = int_to_ptr.vmem [resolvable:$true] %s300_s9 }
  0x7c   : > { %s1845_s27 = scalar_lea.hbm %s2168_s18, 768  ;;  %p1817_p2 = pneg %p2221_p8 }
  0x7d   : > { %p1816_p13 = scmp.ne.s32.totalorder %s2217_s21, %s1845_s27  ;;  %s1820_s2 = scalar_lea.hbm %s2532_s1, 1024 }
  0x7e   : > { %p1821_p12 = scmp.lt.u32.totalorder %s2217_s21, %s2532_s1  ;;  %p1822_p6 = scmp.lt.u32.totalorder %s1820_s2, %s1845_s27 }
  0x7f   : > { %p1818_p5 = pnand %p1817_p2, %p1816_p13  ;;  %p1824_p9 = scmp.lt.u32.totalorder %s1845_s27, %s2217_s21 }
  0x80   : > { %p1823_p7 = por %p1822_p6, %p1821_p12 }
  0x81   : > { %p1819_p1 = pneg %p1818_p5 }
  0x82   : > { %p1825_p10 = por %p1824_p9, %p1823_p7 }
  0x84   : > { %p1826_p11 = pnand %p1825_p10, %p1819_p1 }
  0x86   : > { %1829 = shalt.err (!%p1826_p11)
}
  0x87   : > { %s1830_s18 = scalar_lea.vmem %s2225_s9, 256  ;;  %s1957_s20 = smov [#allocation5]  }
  0x88   : > { %p1831_p4 = scmp.ne.s32.totalorder %s2225_s9, %s1830_s18  ;;  %s1835_s14 = sshll.u32 %s1957_s20, 4  ;;  %s1836_s14 = int_to_ptr.vmem [resolvable:$false] %s1835_s14 }
  0x89   : > { %s1837_s19 = scalar_lea.vmem %s1836_s14, 512  ;;  %p1838_p0 = scmp.lt.s32.totalorder %s2225_s9, %s1836_s14 }
  0x8a   : > { %p1833_p13 = pnand %p1831_p4, %p1817_p2  ;;  %p1839_p12 = scmp.lt.s32.totalorder %s1837_s19, %s1830_s18 }
  0x8c   : > { %p1834_p5 = pneg %p1833_p13  ;;  %p1840_p6 = por %p1839_p12, %p1838_p0 }
  0x8e   : > { %p1841_p7 = pnand %p1840_p6, %p1834_p5 }
  0x90   : > { %1844 = shalt.err (!%p1841_p7)
}
  0x91   : > { %1635 = dma.hbm_to_vmem [thread:$0]  (!%p2221_p8), %s2217_s21, 256, %s2225_s9, %s288_s12  }
  0x92   : > { %309 = sbr.rel (%p2043_p3) target bundleno = 926 (0x39e), region = 44  ;;  %s2255_s27 = sand.u32 (!%p2043_p3), 1, %s1940_s28  }
  0x93   : > { %s1399_s29 = sshll.u32 (!%p2043_p3), %s2255_s27, 4  ;;  %s312_s23 = scalar_lea.sflag (!%p2043_p3), [#allocation3], %s2255_s27 }
  0x94   : > { %s2259_s2 = scalar_lea.vmem (!%p2043_p3), [#allocation2], %s1399_s29  ;;  %p2569_p0 = scmp.ne.s32.totalorder (!%p2043_p3), %s2558_s13, 0 }
  0x99   : > { %1903 = dma.done.wait (%p2569_p0), %s312_s23, 256  }
  0x9a   : > { %1905 = vsyncadd (%p2569_p0), %s312_s23, 4294967040  ;;  %s320_s11 = sand.u32 1, %s2036_s10   ;;  %s322_s21 = sand.u32 1, %s1928_s25  }
  0x9b   : > { %s2267_s24 = sshll.u32 %s322_s21, 4  ;;  %s321_s9 = scalar_lea.sflag [#allocation6], %s320_s11 }
  0x9c   : > { %s324_s12 = scalar_lea.vmem [#allocation5], %s2267_s24  ;;  %p2570_p3 = scmp.ne.s32.totalorder %s2566_s16, 0 }
  0x9e   : > { %1907 = dma.done.wait (%p2570_p3), %s321_s9, 256  }
  0x9f   : > { %1909 = vsyncadd (%p2570_p3), %s321_s9, 4294967040  ;;  %p2571_p8 = scmp.eq.s32.totalorder %s2036_s10, 0 }
  0xa1   : > { %1911 = dma.done.wait (%p2571_p8), [#allocation6], 4096   ;;  %p2572_p2 = pmov %p2571_p8 }
  0xa3   : > { %1913 = vsyncadd (%p2572_p2), [#allocation6], 4294963200  ;;  %p2573_p1 = pmov %p2572_p2 }
  0xa5   : > { %1915 = dma.done.wait (%p2573_p1), [#allocation9], 16384   ;;  %p2574_p9 = pmov %p2573_p1 }
  0xa6   : > { %v399_v0 = vld [vmem:[#allocation7 + $0x80] sm:$0xff]  ;;  %v400_v1 = vld [vmem:[#allocation7 + $0x88] sm:$0xff]  ;;  %v401_v5 = vld [vmem:[#allocation7 + $0x90] sm:$0xff]  ;;  %s1403_s18 = sshll.u32 %s2255_s27, 6  ;;  %s1412_s14 = sshll.u32 %s2036_s10, 10 }
  0xa7   : > { %1917 = vsyncadd (%p2574_p9), [#allocation9], 4294950912  ;;  %v383_v2 = vld [vmem:[#allocation7] sm:$0xff]  ;;  %v1448_v3 = vpack.c.bf16 %v400_v1, %v399_v0  ;;  %v384_v4 = vld [vmem:[#allocation7 + $0x8] sm:$0xff]  ;;  %s2336_s20 = scalar_lea.vmem [#allocation10], %s1403_s18  ;;  %s2379_s23 = scalar_lea.hbm %s2537_s6, %s1412_s14 }
  0xa8   : > { %v402_v6 = vld [vmem:[#allocation7 + $0x98] sm:$0xff]  ;;  %v1450_v7 = vpack.c.bf16 %v384_v4, %v383_v2  ;;  %v385_v9 = vld [vmem:[#allocation7 + $0x10] sm:$0xff]  ;;  %v403_v11 = vld [vmem:[#allocation7 + $0xa0] sm:$0xff]  ;;  %s1230_s11 = scalar_lea.sflag [#allocation4], %s2255_s27  ;;  %p2575_p11 = scmp.ne.s32.totalorder %s2559_s22, 0 }
  0xa9   : > { %v1452_v8 = vpack.c.bf16 %v402_v6, %v401_v5  ;;  %v386_v10 = vld [vmem:[#allocation7 + $0x18] sm:$0xff]  ;;  %1449 = vmatprep.subr.bf16.mxu0 %v1448_v3  ;;  %v404_v12 = vld [vmem:[#allocation7 + $0xa8] sm:$0xff]  ;;  %v387_v15 = vld [vmem:[#allocation7 + $0x20] sm:$0xff]  ;;  %s1959_s24 = smov [#allocation10]  }
  0xaa   : > { %1451 = vmatpush3.bf16.msra.mxu0 %v1450_v7  ;;  %v1454_v13 = vpack.c.bf16 %v386_v10, %v385_v9  ;;  %v1456_v14 = vpack.c.bf16 %v404_v12, %v403_v11  ;;  %v388_v16 = vld [vmem:[#allocation7 + $0x28] sm:$0xff]  ;;  %v405_v17 = vld [vmem:[#allocation7 + $0xb0] sm:$0xff]  ;;  %v406_v18 = vld [vmem:[#allocation7 + $0xb8] sm:$0xff]  ;;  %s1850_s9 = sshll.u32 %s1959_s24, 4  ;;  %s1851_s9 = int_to_ptr.vmem [resolvable:$false] %s1850_s9 }
  0xab   : > { %1453 = vmatprep.subr.bf16.mxu0 %v1452_v8  ;;  %v1458_v19 = vpack.c.bf16 %v388_v16, %v387_v15  ;;  %v1460_v20 = vpack.c.bf16 %v406_v18, %v405_v17  ;;  %v389_v21 = vld [vmem:[#allocation7 + $0x30] sm:$0xff]  ;;  %v390_v22 = vld [vmem:[#allocation7 + $0x38] sm:$0xff]  ;;  %v407_v23 = vld [vmem:[#allocation7 + $0xc0] sm:$0xff] }
  0xac   : > { %v408_v24 = vld [vmem:[#allocation7 + $0xc8] sm:$0xff]  ;;  %v1462_v27 = vpack.c.bf16 %v390_v22, %v389_v21  ;;  %v391_v28 = vld [vmem:[#allocation7 + $0x40] sm:$0xff]  ;;  %v409_v37 = vld [vmem:[#allocation7 + $0xd0] sm:$0xff] }
  0xad   : > { %v2283_v25 = vld [vmem:[%s2259_s2 + $0x8] sm:$0xff]  ;;  %v1464_v32 = vpack.c.bf16 %v408_v24, %v407_v23  ;;  %v493_v35 = vld [vmem:[#allocation8] sm:$0xff]  ;;  %v393_v43 = vld [vmem:[#allocation7 + $0x50] sm:$0xff] }
  0xae   : > { %1455 = vmatpush3.bf16.msra.mxu0 %v1454_v13  ;;  %v2287_v26 = vld [vmem:[%s324_s12 + $0x8] sm:$0xff]  ;;  %v501_v36 = vld [vmem:[#allocation8 + $0x40] sm:$0xff]  ;;  %v413_v3 = vld [vmem:[#allocation7 + $0xf0] sm:$0xff] }
  0xaf   : > { %1457 = vmatprep.subr.bf16.mxu0 %v1456_v14  ;;  %v2291_v29 = vadd.f32 %v2287_v26, %v2283_v25  ;;  %v494_v30 = vld [vmem:[#allocation8 + $0x8] sm:$0xff]  ;;  %v410_v38 = vld [vmem:[#allocation7 + $0xd8] sm:$0xff]  ;;  %v1482_v39 = vpack.c.bf16 %v501_v36, %v493_v35  ;;  %v509_v45 = vld [vmem:[#allocation8 + $0x80] sm:$0xff] }
  0xb0   : > { %v502_v31 = vld [vmem:[#allocation8 + $0x48] sm:$0xff]  ;;  %v517_v46 = vld [vmem:[#allocation8 + $0xc0] sm:$0xff]  ;;  %v1468_v47 = vpack.c.bf16 %v410_v38, %v409_v37  ;;  %v394_v48 = vld [vmem:[#allocation7 + $0x58] sm:$0xff] }
  0xb1   : > { %v392_v33 = vld [vmem:[#allocation7 + $0x48] sm:$0xff]  ;;  %v1480_v34 = vpack.c.bf16 %v502_v31, %v494_v30  ;;  %486 = vmatprep.mubr.f32.mxu0 %v2291_v29  ;;  %v1486_v49 = vpack.c.bf16 %v517_v46, %v509_v45  ;;  %v411_v52 = vld [vmem:[#allocation7 + $0xe0] sm:$0xff]  ;;  %v1470_v57 = vpack.c.bf16 %v394_v48, %v393_v43  ;;  %v414_v4 = vld [vmem:[#allocation7 + $0xf8] sm:$0xff] }
  0xb2   : > { %1459 = vmatpush3.bf16.msra.mxu0 %v1458_v19  ;;  %v510_v40 = vld [vmem:[#allocation8 + $0x88] sm:$0xff]  ;;  %v1466_v42 = vpack.c.bf16 %v392_v33, %v391_v28  ;;  %v525_v55 = vld [vmem:[#allocation8 + $0x100] sm:$0xff]  ;;  %v397_v8 = vld [vmem:[#allocation7 + $0x70] sm:$0xff]  ;;  %v1476_v11 = vpack.c.bf16 %v414_v4, %v413_v3 }
  0xb3   : > { %1461 = vmatprep.subr.bf16.mxu0 %v1460_v20  ;;  %1481 = vmatprep.subr.bf16.mxu1 %v1480_v34  ;;  %v518_v41 = vld [vmem:[#allocation8 + $0xc8] sm:$0xff]  ;;  %v533_v56 = vld [vmem:[#allocation8 + $0x140] sm:$0xff]  ;;  %v398_v9 = vld [vmem:[#allocation7 + $0x78] sm:$0xff] }
  0xb4   : > { %1483 = vmatpush1.bf16.msra.mxu1 %v1482_v39  ;;  %v1484_v44 = vpack.c.bf16 %v518_v41, %v510_v40  ;;  %v526_v50 = vld [vmem:[#allocation8 + $0x108] sm:$0xff]  ;;  %v395_v58 = vld [vmem:[#allocation7 + $0x60] sm:$0xff]  ;;  %v1490_v59 = vpack.c.bf16 %v533_v56, %v525_v55  ;;  %v496_v12 = vld [vmem:[#allocation8 + $0x18] sm:$0xff]  ;;  %v1478_v20 = vpack.c.bf16 %v398_v9, %v397_v8 }
  0xb5   : > { %v534_v51 = vld [vmem:[#allocation8 + $0x148] sm:$0xff]  ;;  %v541_v1 = vld [vmem:[#allocation8 + $0x180] sm:$0xff]  ;;  %v504_v16 = vld [vmem:[#allocation8 + $0x58] sm:$0xff] }
  0xb6   : > { %1463 = vmatpush3.bf16.msra.mxu0 %v1462_v27  ;;  %v412_v53 = vld [vmem:[#allocation7 + $0xe8] sm:$0xff]  ;;  %1485 = vmatprep.subr.bf16.mxu1 %v1484_v44  ;;  %v1488_v54 = vpack.c.bf16 %v534_v51, %v526_v50  ;;  %v549_v2 = vld [vmem:[#allocation8 + $0x1c0] sm:$0xff]  ;;  %v495_v22 = vld [vmem:[#allocation8 + $0x10] sm:$0xff]  ;;  %v1512_v27 = vpack.c.bf16 %v504_v16, %v496_v12 }
  0xb7   : > { %1465 = vmatprep.subr.bf16.mxu0 %v1464_v32  ;;  %v542_v60 = vld [vmem:[#allocation8 + $0x188] sm:$0xff]  ;;  %v1472_v62 = vpack.c.bf16 %v412_v53, %v411_v52  ;;  %v1494_v10 = vpack.c.bf16 %v549_v2, %v541_v1  ;;  %v557_v14 = vld [vmem:[#allocation8 + $0x200] sm:$0xff]  ;;  %v503_v23 = vld [vmem:[#allocation8 + $0x50] sm:$0xff] }
  0xb8   : > { %1487 = vmatpush1.bf16.msra.mxu1 %v1486_v49  ;;  %v550_v61 = vld [vmem:[#allocation8 + $0x1c8] sm:$0xff]  ;;  %v565_v15 = vld [vmem:[#allocation8 + $0x240] sm:$0xff]  ;;  %v512_v28 = vld [vmem:[#allocation8 + $0x98] sm:$0xff]  ;;  %v1514_v37 = vpack.c.bf16 %v503_v23, %v495_v22 }
  0xb9   : > { %v396_v63 = vld [vmem:[#allocation7 + $0x68] sm:$0xff]  ;;  %1489 = vmatprep.subr.bf16.mxu1 %v1488_v54  ;;  %v1492_v0 = vpack.c.bf16 %v550_v61, %v542_v60  ;;  %v2295_v19 = vld [vmem:[%s2259_s2] sm:$0xff]  ;;  %v1498_v24 = vpack.c.bf16 %v565_v15, %v557_v14  ;;  %v520_v33 = vld [vmem:[#allocation8 + $0xd8] sm:$0xff]  ;;  %s1248_s2 = sshll.u32 %s2336_s20, 4  ;;  %s1249_s2 = int_to_ptr.vmem [resolvable:$true] %s1248_s2 }
  0xba   : > { %1467 = vmatpush3.bf16.msra.mxu0 %v1466_v42  ;;  %v558_v5 = vld [vmem:[#allocation8 + $0x208] sm:$0xff]  ;;  %v1474_v7 = vpack.c.bf16 %v396_v63, %v395_v58  ;;  %v2299_v21 = vld [vmem:[%s324_s12] sm:$0xff]  ;;  %v1516_v39 = vpack.c.bf16 %v520_v33, %v512_v28  ;;  %v528_v43 = vld [vmem:[#allocation8 + $0x118] sm:$0xff]  ;;  %s1846_s21 = scalar_lea.vmem %s1249_s2, 1024  ;;  %s1852_s12 = scalar_lea.vmem %s1851_s9, 2048 }
  0xbb   : > { %1469 = vmatprep.subr.bf16.mxu0 %v1468_v47  ;;  %v566_v6 = vld [vmem:[#allocation8 + $0x248] sm:$0xff]  ;;  %v573_v31 = vld [vmem:[#allocation8 + $0x280] sm:$0xff]  ;;  %v2303_v36 = vadd.f32 %v2299_v21, %v2295_v19  ;;  %v511_v40 = vld [vmem:[#allocation8 + $0x90] sm:$0xff]  ;;  %p1847_p10 = scmp.ne.s32.totalorder %s1249_s2, %s1846_s21  ;;  %p1853_p5 = scmp.lt.s32.totalorder %s1249_s2, %s1851_s9 }
  0xbc   : > { %1491 = vmatpush1.bf16.msra.mxu1 %v1490_v59  ;;  %v1496_v13 = vpack.c.bf16 %v566_v6, %v558_v5  ;;  %v574_v17 = vld [vmem:[#allocation8 + $0x288] sm:$0xff]  ;;  %v581_v32 = vld [vmem:[#allocation8 + $0x2c0] sm:$0xff]  ;;  %v519_v41 = vld [vmem:[#allocation8 + $0xd0] sm:$0xff]  ;;  %p1854_p12 = scmp.lt.s32.totalorder %s1852_s12, %s1846_s21 }
  0xbd   : > { %1493 = vmatprep.subr.bf16.mxu1 %v1492_v0  ;;  %v582_v18 = vld [vmem:[#allocation8 + $0x2c8] sm:$0xff]  ;;  %v1502_v38 = vpack.c.bf16 %v581_v32, %v573_v31  ;;  %v536_v44 = vld [vmem:[#allocation8 + $0x158] sm:$0xff]  ;;  %v1518_v45 = vpack.c.bf16 %v519_v41, %v511_v40  ;;  %v527_v47 = vld [vmem:[#allocation8 + $0x110] sm:$0xff]  ;;  %p1848_p4 = pnand %p1847_p10, %p2575_p11 }
  0xbe   : > { %1471 = vmatpush3.bf16.msra.mxu0 %v1470_v57  ;;  %v1500_v30 = vpack.c.bf16 %v582_v18, %v574_v17  ;;  %v590_v34 = vld [vmem:[#allocation8 + $0x308] sm:$0xff]  ;;  %v1520_v46 = vpack.c.bf16 %v536_v44, %v528_v43  ;;  %v535_v48 = vld [vmem:[#allocation8 + $0x150] sm:$0xff]  ;;  %v544_v49 = vld [vmem:[#allocation8 + $0x198] sm:$0xff]  ;;  %p1855_p6 = por %p1854_p12, %p1853_p5 }
  0xbf   : > { %1473 = vmatprep.subr.bf16.mxu0 %v1472_v62  ;;  %v598_v35 = vld [vmem:[#allocation8 + $0x348] sm:$0xff]  ;;  %v552_v50 = vld [vmem:[#allocation8 + $0x1d8] sm:$0xff]  ;;  %v1522_v51 = vpack.c.bf16 %v535_v48, %v527_v47  ;;  %v543_v53 = vld [vmem:[#allocation8 + $0x190] sm:$0xff]  ;;  %p1849_p13 = pneg %p1848_p4 }
  0xc0   : > { %1495 = vmatpush1.bf16.msra.mxu1 %v1494_v10  ;;  %v1504_v42 = vpack.c.bf16 %v598_v35, %v590_v34  ;;  %v1524_v52 = vpack.c.bf16 %v552_v50, %v544_v49  ;;  %v551_v54 = vld [vmem:[#allocation8 + $0x1d0] sm:$0xff]  ;;  %v560_v55 = vld [vmem:[#allocation8 + $0x218] sm:$0xff]  ;;  %v597_v8 = vld [vmem:[#allocation8 + $0x340] sm:$0xff] }
  0xc1   : > { %1497 = vmatprep.subr.bf16.mxu1 %v1496_v13  ;;  %v568_v56 = vld [vmem:[#allocation8 + $0x258] sm:$0xff]  ;;  %v1526_v57 = vpack.c.bf16 %v551_v54, %v543_v53  ;;  %v559_v59 = vld [vmem:[#allocation8 + $0x210] sm:$0xff]  ;;  %v606_v13 = vld [vmem:[#allocation8 + $0x388] sm:$0xff]  ;;  %p1856_p7 = pnand %p1855_p6, %p1849_p13 }
  0xc2   : > { %1475 = vmatpush3.bf16.msra.mxu0 %v1474_v7  ;;  %v1528_v58 = vpack.c.bf16 %v568_v56, %v560_v55  ;;  %v567_v60 = vld [vmem:[#allocation8 + $0x250] sm:$0xff]  ;;  %v576_v61 = vld [vmem:[#allocation8 + $0x298] sm:$0xff]  ;;  %v589_v7 = vld [vmem:[#allocation8 + $0x300] sm:$0xff] }
  0xc3   : > { %1477 = vmatprep.subr.bf16.mxu0 %v1476_v11  ;;  %v584_v62 = vld [vmem:[#allocation8 + $0x2d8] sm:$0xff]  ;;  %v1530_v63 = vpack.c.bf16 %v567_v60, %v559_v59  ;;  %v575_v1 = vld [vmem:[#allocation8 + $0x290] sm:$0xff]  ;;  %v1506_v10 = vpack.c.bf16 %v597_v8, %v589_v7  ;;  %v614_v14 = vld [vmem:[#allocation8 + $0x3c8] sm:$0xff] }
  0xc4   : > { %1499 = vmatpush1.bf16.msra.mxu1 %v1498_v24  ;;  %v1532_v0 = vpack.c.bf16 %v584_v62, %v576_v61  ;;  %v583_v2 = vld [vmem:[#allocation8 + $0x2d0] sm:$0xff]  ;;  %v592_v3 = vld [vmem:[#allocation8 + $0x318] sm:$0xff]  ;;  %v1508_v15 = vpack.c.bf16 %v614_v14, %v606_v13  ;;  %v605_v18 = vld [vmem:[#allocation8 + $0x380] sm:$0xff] }
  0xc5   : > { %1501 = vmatprep.subr.bf16.mxu1 %v1500_v30  ;;  %v600_v4 = vld [vmem:[#allocation8 + $0x358] sm:$0xff]  ;;  %v1534_v5 = vpack.c.bf16 %v583_v2, %v575_v1  ;;  %v591_v9 = vld [vmem:[#allocation8 + $0x310] sm:$0xff]  ;;  %v613_v22 = vld [vmem:[#allocation8 + $0x3c0] sm:$0xff] }
  0xc6   : > { %1479 = vmatpush3.bf16.msra.mxu0 %v1478_v20  ;;  %v1536_v6 = vpack.c.bf16 %v600_v4, %v592_v3  ;;  %v599_v11 = vld [vmem:[#allocation8 + $0x350] sm:$0xff]  ;;  %v608_v16 = vld [vmem:[#allocation8 + $0x398] sm:$0xff]  ;;  %v498_v30 = vld [vmem:[#allocation8 + $0x28] sm:$0xff] }
  0xc7   : > { %1513 = vmatprep.subr.bf16.mxu0 %v1512_v27  ;;  %v1538_v12 = vpack.c.bf16 %v599_v11, %v591_v9  ;;  %v616_v17 = vld [vmem:[#allocation8 + $0x3d8] sm:$0xff]  ;;  %v607_v23 = vld [vmem:[#allocation8 + $0x390] sm:$0xff]  ;;  %v1510_v27 = vpack.c.bf16 %v613_v22, %v605_v18  ;;  %v506_v31 = vld [vmem:[#allocation8 + $0x68] sm:$0xff] }
  0xc8   : > { %1503 = vmatpush1.bf16.msra.mxu1 %v1502_v38  ;;  %v1540_v20 = vpack.c.bf16 %v616_v17, %v608_v16  ;;  %v615_v24 = vld [vmem:[#allocation8 + $0x3d0] sm:$0xff]  ;;  %v500_v32 = vld [vmem:[#allocation8 + $0x38] sm:$0xff]  ;;  %v1544_v33 = vpack.c.bf16 %v506_v31, %v498_v30  ;;  %v497_v41 = vld [vmem:[#allocation8 + $0x20] sm:$0xff] }
  0xc9   : > { %487 = vmatmul.mubr.f32.vlgmr.msra.gmra.mrb[0].mxu0 %v2303_v36  ;;  %1505 = vmatprep.subr.bf16.mxu1 %v1504_v42  ;;  %v1542_v28 = vpack.c.bf16 %v615_v24, %v607_v23  ;;  %v508_v34 = vld [vmem:[#allocation8 + $0x78] sm:$0xff]  ;;  %v505_v42 = vld [vmem:[#allocation8 + $0x60] sm:$0xff]  ;;  %v499_v44 = vld [vmem:[#allocation8 + $0x30] sm:$0xff] }
  0xca   : > { %1515 = vmatpush1.bf16.msra.mxu0 %v1514_v37  ;;  %v1576_v35 = vpack.c.bf16 %v508_v34, %v500_v32  ;;  %v1958_v37 = vmov 0.0   ;;  %v522_v47 = vld [vmem:[#allocation8 + $0xe8] sm:$0xff]  ;;  %v516_v48 = vld [vmem:[#allocation8 + $0xb8] sm:$0xff]  ;;  %v513_v53 = vld [vmem:[#allocation8 + $0xa0] sm:$0xff] }
  0xcb   : > { %1517 = vmatprep.subr.bf16.mxu0 %v1516_v39  ;;  %727 = vmatprep.mubr.f32.mxu1 %v1958_v37  ;;  %v1405_v39 = vld [vmem:[%s2534_s3] ss:$0 sm:$0xff]  ;;  %v524_v49 = vld [vmem:[#allocation8 + $0xf8] sm:$0xff]  ;;  %v523_v59 = vld [vmem:[#allocation8 + $0xf0] sm:$0xff] }
  0xcc   : > { %1507 = vmatpush1.bf16.msra.mxu1 %v1506_v10  ;;  %798 = vmatprep.mubr.f32.mxu0 %v1958_v37  ;;  %v521_v54 = vld [vmem:[#allocation8 + $0xe0] sm:$0xff]  ;;  %v530_v60 = vld [vmem:[#allocation8 + $0x128] sm:$0xff]  ;;  %v532_v62 = vld [vmem:[#allocation8 + $0x138] sm:$0xff] }
  0xcd   : > { %1509 = vmatprep.subr.bf16.mxu1 %v1508_v15  ;;  %v538_v61 = vld [vmem:[#allocation8 + $0x168] sm:$0xff]  ;;  %v529_v2 = vld [vmem:[#allocation8 + $0x120] sm:$0xff]  ;;  %v539_v7 = vld [vmem:[#allocation8 + $0x170] sm:$0xff] }
  0xce   : > { %1519 = vmatpush1.bf16.msra.mxu0 %v1518_v45  ;;  %v507_v45 = vld [vmem:[#allocation8 + $0x70] sm:$0xff]  ;;  %v537_v3 = vld [vmem:[#allocation8 + $0x160] sm:$0xff]  ;;  %v1552_v4 = vpack.c.bf16 %v538_v61, %v530_v60  ;;  %v546_v8 = vld [vmem:[#allocation8 + $0x1a8] sm:$0xff] }
  0xcf   : > { %1521 = vmatprep.subr.bf16.mxu0 %v1520_v46  ;;  %v514_v46 = vld [vmem:[#allocation8 + $0xa8] sm:$0xff]  ;;  %v548_v10 = vld [vmem:[#allocation8 + $0x1b8] sm:$0xff]  ;;  %v545_v14 = vld [vmem:[#allocation8 + $0x1a0] sm:$0xff] }
  0xd0   : > { %1511 = vmatpush1.bf16.msra.mxu1 %v1510_v27  ;;  %v1548_v56 = vpack.c.bf16 %v522_v47, %v514_v46  ;;  %v554_v9 = vld [vmem:[#allocation8 + $0x1e8] sm:$0xff]  ;;  %v556_v11 = vld [vmem:[#allocation8 + $0x1f8] sm:$0xff]  ;;  %v553_v15 = vld [vmem:[#allocation8 + $0x1e0] sm:$0xff] }
  0xd1   : > { %1545 = vmatprep.subr.bf16.mxu1 %v1544_v33  ;;  %v1556_v16 = vpack.c.bf16 %v554_v9, %v546_v8  ;;  %v1588_v17 = vpack.c.bf16 %v556_v11, %v548_v10  ;;  %v547_v18 = vld [vmem:[#allocation8 + $0x1b0] sm:$0xff]  ;;  %v562_v22 = vld [vmem:[#allocation8 + $0x228] sm:$0xff]  ;;  %v564_v24 = vld [vmem:[#allocation8 + $0x238] sm:$0xff] }
  0xd2   : > { %1523 = vmatpush1.bf16.msra.mxu0 %v1522_v51  ;;  %v1546_v51 = vpack.c.bf16 %v505_v42, %v497_v41  ;;  %v570_v23 = vld [vmem:[#allocation8 + $0x268] sm:$0xff]  ;;  %v572_v27 = vld [vmem:[#allocation8 + $0x278] sm:$0xff]  ;;  %v561_v31 = vld [vmem:[#allocation8 + $0x220] sm:$0xff] }
  0xd3   : > { %1525 = vmatprep.subr.bf16.mxu0 %v1524_v52  ;;  %v1578_v52 = vpack.c.bf16 %v507_v45, %v499_v44  ;;  %v569_v32 = vld [vmem:[#allocation8 + $0x260] sm:$0xff]  ;;  %v1560_v33 = vpack.c.bf16 %v570_v23, %v562_v22  ;;  %v1592_v34 = vpack.c.bf16 %v572_v27, %v564_v24  ;;  %v588_v41 = vld [vmem:[#allocation8 + $0x2f8] sm:$0xff]  ;;  %v595_v61 = vld [vmem:[#allocation8 + $0x330] sm:$0xff] }
  0xd4   : > { %v1562_v42 = vpack.c.bf16 %v569_v32, %v561_v31  ;;  %v577_v44 = vld [vmem:[#allocation8 + $0x2a0] sm:$0xff]  ;;  %v611_v9 = vld [vmem:[#allocation8 + $0x3b0] sm:$0xff] }
  0xd5   : > { %v585_v45 = vld [vmem:[#allocation8 + $0x2e0] sm:$0xff]  ;;  %v619_v10 = vld [vmem:[#allocation8 + $0x3f0] sm:$0xff] }
  0xd6   : > { %1527 = vmatpush1.bf16.msra.mxu0 %v1526_v57  ;;  %v1580_v57 = vpack.c.bf16 %v524_v49, %v516_v48  ;;  %v579_v48 = vld [vmem:[#allocation8 + $0x2b0] sm:$0xff]  ;;  %v617_v8 = vld [vmem:[#allocation8 + $0x3e0] sm:$0xff] }
  0xd7   : > { %1529 = vmatprep.subr.bf16.mxu0 %v1528_v58  ;;  %v515_v58 = vld [vmem:[#allocation8 + $0xb0] sm:$0xff]  ;;  %v621_v24 = vld [vmem:[%s2536_s5] sm:$0xff] }
  0xd8   : > { %v1582_v1 = vpack.c.bf16 %v523_v59, %v515_v58  ;;  %v587_v49 = vld [vmem:[#allocation8 + $0x2f0] sm:$0xff]  ;;  %v601_v58 = vld [vmem:[#allocation8 + $0x360] sm:$0xff] }
  0xda   : > { %1531 = vmatpush1.bf16.msra.mxu0 %v1530_v63  ;;  %v540_v63 = vld [vmem:[#allocation8 + $0x178] sm:$0xff] }
  0xdb   : > { %1533 = vmatprep.subr.bf16.mxu0 %v1532_v0  ;;  %v1550_v0 = vpack.c.bf16 %v521_v54, %v513_v53  ;;  %v604_v53 = vld [vmem:[#allocation8 + $0x378] sm:$0xff]  ;;  %v1566_v54 = vpack.c.bf16 %v585_v45, %v577_v44 }
  0xde   : > { %1535 = vmatpush1.bf16.msra.mxu0 %v1534_v5  ;;  %v1584_v5 = vpack.c.bf16 %v540_v63, %v532_v62  ;;  %v603_v62 = vld [vmem:[#allocation8 + $0x370] sm:$0xff]  ;;  %v610_v63 = vld [vmem:[#allocation8 + $0x3a8] sm:$0xff] }
  0xdf   : > { %1537 = vmatprep.subr.bf16.mxu0 %v1536_v6  ;;  %v531_v6 = vld [vmem:[#allocation8 + $0x130] sm:$0xff] }
  0xe0   : > { %v1586_v13 = vpack.c.bf16 %v539_v7, %v531_v6 }
  0xe2   : > { %1539 = vmatpush1.bf16.msra.mxu0 %v1538_v12  ;;  %v1554_v12 = vpack.c.bf16 %v537_v3, %v529_v2  ;;  %v620_v2 = vld [vmem:[#allocation8 + $0x3f8] sm:$0xff] }
  0xe3   : > { %1541 = vmatprep.subr.bf16.mxu0 %v1540_v20  ;;  %v555_v20 = vld [vmem:[#allocation8 + $0x1f0] sm:$0xff] }
  0xe4   : > { %v1590_v30 = vpack.c.bf16 %v555_v20, %v547_v18  ;;  %v623_v20 = vlaneseq }
  0xe6   : > { %1543 = vmatpush1.bf16.msra.mxu0 %v1542_v28  ;;  %v1558_v28 = vpack.c.bf16 %v553_v15, %v545_v14  ;;  %v1094_v14 = vmul.f32 %v2283_v25, %v2283_v25  ;;  %v624_v22 = vshrl.u32 %v623_v20, 7 }
  0xe7   : > { %1577 = vmatprep.subr.bf16.mxu0 %v1576_v35  ;;  %v563_v35 = vld [vmem:[#allocation8 + $0x230] sm:$0xff] }
  0xe8   : > { %v625_v23 = vsub.s32 0, %v624_v22  ;;  %v629_v27 = vsub.s32 1, %v624_v22  ;;  %v641_v45 = vsub.s32 4, %v624_v22 }
  0xea   : > { %v630_v32 = vrot.slane %v621_v24, %v629_v27 }
 0x19c   : > { %v1445_v38 = vpop.f32.mrb[0].mxu0 }
 0x19d   : > { %v1446_v40 = vpop.f32.mrb[1].mxu0 }
 0x19e   : > { %v1447_v43 = vadd.f32 %v1446_v40, %v1445_v38  ;;  %v578_v38 = vld [vmem:[#allocation8 + $0x2a8] sm:$0xff]  ;;  %v580_v40 = vld [vmem:[#allocation8 + $0x2b8] sm:$0xff] }
 0x19f   : > { %v1596_v47 = vpack.c.bf16 %v588_v41, %v580_v40 }
 0x1a0   : > { %v489_v50 = vadd.f32 %v1447_v43, %v1405_v39  ;;  %v586_v39 = vld [vmem:[#allocation8 + $0x2e8] sm:$0xff] }
 0x1a1   : > { %v1564_v46 = vpack.c.bf16 %v586_v39, %v578_v38 }
 0x1a2   : > { %v2309_v55 = vmax.f32 %v489_v50, 0.0  ;;  %v594_v50 = vld [vmem:[#allocation8 + $0x328] sm:$0xff] }
 0x1a4   : > { %728 = vmatmul.mubr.f32.vlgmr.msra.gmra.mrb[0].mxu1 %v2309_v55  ;;  %799 = vmatmul.mubr.f32.vlgmr.msra.gmra.mrb[2].mxu0 %v2309_v55 }
 0x1a5   : > { %1547 = vmatpush1.bf16.msra.mxu1 %v1546_v51  ;;  %1579 = vmatpush1.bf16.msra.mxu0 %v1578_v52  ;;  %v602_v51 = vld [vmem:[#allocation8 + $0x368] sm:$0xff]  ;;  %v596_v52 = vld [vmem:[#allocation8 + $0x338] sm:$0xff] }
 0x1a6   : > { %1549 = vmatprep.subr.bf16.mxu1 %v1548_v56  ;;  %1581 = vmatprep.subr.bf16.mxu0 %v1580_v57  ;;  %v1598_v56 = vpack.c.bf16 %v587_v49, %v579_v48  ;;  %v593_v57 = vld [vmem:[#allocation8 + $0x320] sm:$0xff]  ;;  %v1568_v59 = vpack.c.bf16 %v602_v51, %v594_v50  ;;  %v1600_v60 = vpack.c.bf16 %v604_v53, %v596_v52  ;;  %v653_v48 = vsub.s32 7, %v624_v22 }
 0x1a7   : > { %869 = vmatprep.mubr.f32.mxu1 %v1958_v37  ;;  %940 = vmatprep.mubr.f32.mxu0 %v1958_v37  ;;  %v571_v37 = vld [vmem:[#allocation8 + $0x270] sm:$0xff]  ;;  %v1570_v3 = vpack.c.bf16 %v601_v58, %v593_v57  ;;  %v642_v49 = vrot.slane %v621_v24, %v641_v45 }
 0x1a8   : > { %v1594_v43 = vpack.c.bf16 %v571_v37, %v563_v35 }
 0x1a9   : > { %1551 = vmatpush1.bf16.msra.mxu1 %v1550_v0  ;;  %1583 = vmatpush1.bf16.msra.mxu0 %v1582_v1  ;;  %v618_v0 = vld [vmem:[#allocation8 + $0x3e8] sm:$0xff]  ;;  %v612_v1 = vld [vmem:[#allocation8 + $0x3b8] sm:$0xff] }
 0x1aa   : > { %1553 = vmatprep.subr.bf16.mxu1 %v1552_v4  ;;  %1585 = vmatprep.subr.bf16.mxu0 %v1584_v5  ;;  %v1602_v4 = vpack.c.bf16 %v603_v62, %v595_v61  ;;  %v609_v5 = vld [vmem:[#allocation8 + $0x3a0] sm:$0xff]  ;;  %v1572_v6 = vpack.c.bf16 %v618_v0, %v610_v63  ;;  %v1604_v7 = vpack.c.bf16 %v620_v2, %v612_v1 }
 0x1ab   : > { %v1574_v11 = vpack.c.bf16 %v617_v8, %v609_v5 }
 0x1ad   : > { %1555 = vmatpush1.bf16.msra.mxu1 %v1554_v12  ;;  %1587 = vmatpush1.bf16.msra.mxu0 %v1586_v13  ;;  %v1606_v12 = vpack.c.bf16 %v619_v10, %v611_v9  ;;  %v1093_v13 = vmul.f32 %v2295_v19, %v2295_v19 }
 0x1ae   : > { %1557 = vmatprep.subr.bf16.mxu1 %v1556_v16  ;;  %1589 = vmatprep.subr.bf16.mxu0 %v1588_v17  ;;  %v1098_v16 = vmul.f32 %v2299_v21, %v2299_v21  ;;  %v1099_v17 = vmul.f32 %v2287_v26, %v2287_v26 }
 0x1af   : > { %v1095_v15 = vadd.f32 %v1094_v14, %v1093_v13 }
 0x1b0   : > { %v1100_v18 = vadd.f32 %v1099_v17, %v1098_v16 }
 0x1b1   : > { %1559 = vmatpush1.bf16.msra.mxu1 %v1558_v28  ;;  %1591 = vmatpush1.bf16.msra.mxu0 %v1590_v30  ;;  %v637_v28 = vsub.s32 3, %v624_v22  ;;  %v626_v30 = vrot.slane %v621_v24, %v625_v23 }
 0x1b2   : > { %1561 = vmatprep.subr.bf16.mxu1 %v1560_v33  ;;  %1593 = vmatprep.subr.bf16.mxu0 %v1592_v34 }
 0x1b3   : > { %1096 = vadd.xlane.f32.xlu0 %v1095_v15  ;;  %v638_v33 = vrot.slane %v621_v24, %v637_v28 }
 0x1b5   : > { %1563 = vmatpush1.bf16.msra.mxu1 %v1562_v42  ;;  %1595 = vmatpush1.bf16.msra.mxu0 %v1594_v43 }
 0x1b6   : > { %1565 = vmatprep.subr.bf16.mxu1 %v1564_v46  ;;  %1597 = vmatprep.subr.bf16.mxu0 %v1596_v47  ;;  %v645_v46 = vsub.s32 5, %v624_v22  ;;  %v649_v47 = vsub.s32 6, %v624_v22 }
 0x1b7   : > { %1101 = vadd.xlane.f32.xlu0 %v1100_v18 }
 0x1b8   : > { %v646_v50 = vrot.slane %v621_v24, %v645_v46  ;;  %v650_v51 = vrot.slane %v621_v24, %v649_v47 }
 0x1b9   : > { %1567 = vmatpush1.bf16.msra.mxu1 %v1566_v54  ;;  %1599 = vmatpush1.bf16.msra.mxu0 %v1598_v56  ;;  %v654_v54 = vrot.slane %v621_v24, %v653_v48 }
 0x1ba   : > { %1569 = vmatprep.subr.bf16.mxu1 %v1568_v59  ;;  %1601 = vmatprep.subr.bf16.mxu0 %v1600_v60 }
 0x1bd   : > { %1571 = vmatpush1.bf16.msra.mxu1 %v1570_v3  ;;  %1603 = vmatpush1.bf16.msra.mxu0 %v1602_v4 }
 0x1be   : > { %1573 = vmatprep.subr.bf16.mxu1 %v1572_v6  ;;  %1605 = vmatprep.subr.bf16.mxu0 %v1604_v7 }
 0x1c1   : > { %1575 = vmatpush1.bf16.msra.mxu1 %v1574_v11  ;;  %1607 = vmatpush1.bf16.msra.mxu0 %v1606_v12 }
 0x1c4   : > { %870 = vmatmul.mubr.f32.vlgmr.msra.gmra.mrb[2].mxu1 %v2309_v55  ;;  %941 = vmatmul.mubr.f32.vlgmr.msra.gmra.mrb[4].mxu0 %v2309_v55  ;;  %v633_v55 = vsub.s32 2, %v624_v22 }
 0x1c6   : > { %v634_v31 = vrot.slane %v621_v24, %v633_v55 }
 0x277   : > { %v729_v34 = vpop.f32.mrb[0].mxu1  ;;  %v800_v35 = vpop.f32.mrb[2].mxu0 }
 0x278   : > { %v730_v37 = vadd.f32 %v729_v34, %v626_v30  ;;  %v801_v38 = vadd.f32 %v800_v35, %v634_v31  ;;  %v731_v39 = vpop.f32.mrb[1].mxu1  ;;  %v802_v40 = vpop.f32.mrb[3].mxu0 }
 0x279   : > { %v732_v41 = vadd.f32 %v731_v39, %v630_v32  ;;  %v803_v42 = vadd.f32 %v802_v40, %v638_v33 }
 0x27a   : > { %v947_v43 = vmax.f32 %v730_v37, %v801_v38 }
 0x27b   : > { %v948_v44 = vmax.f32 %v732_v41, %v803_v42 }
 0x297   : > { %v871_v52 = vpop.f32.mrb[2].mxu1  ;;  %v942_v53 = vpop.f32.mrb[4].mxu0 }
 0x298   : > { %v872_v56 = vadd.f32 %v871_v52, %v642_v49  ;;  %v873_v57 = vpop.f32.mrb[3].mxu1  ;;  %v944_v58 = vpop.f32.mrb[5].mxu0  ;;  %v943_v61 = vadd.f32 %v942_v53, %v650_v51 }
 0x299   : > { %v874_v59 = vadd.f32 %v873_v57, %v646_v50  ;;  %v945_v63 = vadd.f32 %v944_v58, %v654_v54 }
 0x29a   : > { %v949_v60 = vmax.f32 %v947_v43, %v872_v56 }
 0x29b   : > { %v950_v62 = vmax.f32 %v948_v44, %v874_v59 }
 0x29c   : > { %v951_v0 = vmax.f32 %v949_v60, %v943_v61 }
 0x29d   : > { %v952_v1 = vmax.f32 %v950_v62, %v945_v63 }
 0x29e   : > { %v953_v2 = vsub.f32 %v730_v37, %v951_v0  ;;  %v959_v3 = vsub.f32 %v801_v38, %v951_v0  ;;  %v965_v4 = vsub.f32 %v872_v56, %v951_v0  ;;  %v971_v5 = vsub.f32 %v943_v61, %v951_v0 }
 0x29f   : > { %v954_v6 = vsub.f32 %v732_v41, %v952_v1  ;;  %v960_v7 = vsub.f32 %v803_v42, %v952_v1  ;;  %v966_v8 = vsub.f32 %v874_v59, %v952_v1  ;;  %v972_v9 = vsub.f32 %v945_v63, %v952_v1 }
 0x2a0   : > { %v955_v10 = vmul.f32 1.442695, %v953_v2  ;;  %v961_v11 = vmul.f32 1.442695, %v959_v3  ;;  %v967_v12 = vmul.f32 1.442695, %v965_v4 }
 0x2a1   : > { %v973_v13 = vmul.f32 1.442695, %v971_v5  ;;  %v957_v14 = vmul.f32 1.442695, %v954_v6  ;;  %v963_v15 = vmul.f32 1.442695, %v960_v7 }
 0x2a2   : > { %1709 = vpow2.f32 %v955_v10  ;;  %v969_v16 = vmul.f32 1.442695, %v966_v8  ;;  %v975_v17 = vmul.f32 1.442695, %v972_v9 }
 0x2a3   : > { %1711 = vpow2.f32 %v961_v11 }
 0x2a4   : > { %1713 = vpow2.f32 %v967_v12 }
 0x2a5   : > { %1715 = vpow2.f32 %v973_v13 }
 0x2a6   : > { %1717 = vpow2.f32 %v957_v14 }
 0x2a7   : > { %1719 = vpow2.f32 %v963_v15 }
 0x2a8   : > { %1721 = vpow2.f32 %v969_v16 }
 0x2a9   : > { %1723 = vpow2.f32 %v975_v17 }
 0x2ac   : > { %v1710_v18 = vpop.eup %1709 }
 0x2ad   : > { %v1712_v20 = vpop.eup %1711 }
 0x2ae   : > { %v1714_v22 = vpop.eup %1713  ;;  %v977_v23 = vadd.f32 %v1712_v20, %v1710_v18 }
 0x2af   : > { %v1716_v55 = vpop.eup %1715 }
 0x2b0   : > { %v1718_v24 = vpop.eup %1717  ;;  %v979_v27 = vadd.f32 %v1714_v22, %v977_v23 }
 0x2b1   : > { %v1720_v28 = vpop.eup %1719 }
 0x2b2   : > { %v981_v30 = vadd.f32 %v1716_v55, %v979_v27  ;;  %v978_v31 = vadd.f32 %v1720_v28, %v1718_v24  ;;  %v1722_v32 = vpop.eup %1721 }
 0x2b3   : > { %v1724_v34 = vpop.eup %1723 }
 0x2b4   : > { %1725 = vrcp.f32 %v981_v30  ;;  %v980_v33 = vadd.f32 %v1722_v32, %v978_v31 }
 0x2b6   : > { %v982_v35 = vadd.f32 %v1724_v34, %v980_v33 }
 0x2b8   : > { %1727 = vrcp.f32 %v982_v35 }
 0x2be   : > { %v1726_v37 = vpop.eup %1725 }
 0x2bf   : > { %v985_v38 = vmul.f32 %v1726_v37, %v2303_v36 }
 0x2c1   : > { %v987_v39 = vmul.f32 %v1710_v18, %v985_v38  ;;  %v989_v40 = vmul.f32 %v1712_v20, %v985_v38  ;;  %v2328_v41 = vmul.f32 %v1714_v22, %v985_v38  ;;  %v2330_v42 = vmul.f32 %v1716_v55, %v985_v38 }
 0x2c2   : > { %v1728_v43 = vpop.eup %1727 }
 0x2c3   : > { %v986_v44 = vmul.f32 %v1728_v43, %v2291_v29  ;;  %v1038_v45 = vmul.f32 %v2328_v41, %v2328_v41  ;;  %v1003_v46 = vmul.f32 %v987_v39, %v987_v39  ;;  %v1073_v47 = vmul.f32 %v987_v39, %v2299_v21  ;;  %995 = vst [vmem:[%s2336_s20] sm:$0xff] %v987_v39 }
 0x2c4   : > { %997 = vst [vmem:[%s2336_s20 + $0x10] sm:$0xff] %v989_v40  ;;  %999 = vst [vmem:[%s2336_s20 + $0x20] sm:$0xff] %v2328_v41  ;;  %v1023_v36 = vmul.f32 %v989_v40, %v989_v40  ;;  %v1013_v29 = vmul.f32 %v2328_v41, %v987_v39  ;;  %v1048_v48 = vmul.f32 %v2330_v42, %v2330_v42 }
 0x2c5   : > { %1001 = vst [vmem:[%s2336_s20 + $0x30] sm:$0xff] %v2330_v42  ;;  %v1053_v49 = vmul.f32 %v987_v39, %v2295_v19  ;;  %v988_v50 = vmul.f32 %v1718_v24, %v986_v44  ;;  %v990_v51 = vmul.f32 %v1720_v28, %v986_v44  ;;  %v992_v52 = vmul.f32 %v1722_v32, %v986_v44 }
 0x2c6   : > { %v994_v53 = vmul.f32 %v1724_v34, %v986_v44  ;;  %v1008_v54 = vmul.f32 %v989_v40, %v987_v39  ;;  %v1028_v56 = vmul.f32 %v2328_v41, %v989_v40  ;;  %v1018_v57 = vmul.f32 %v2330_v42, %v987_v39 }
 0x2c7   : > { %v1058_v58 = vmul.f32 %v989_v40, %v2295_v19  ;;  %v1039_v59 = vmul.f32 %v992_v52, %v992_v52  ;;  %v1004_v60 = vmul.f32 %v988_v50, %v988_v50  ;;  %v1074_v61 = vmul.f32 %v988_v50, %v2287_v26  ;;  %996 = vst [vmem:[%s2336_s20 + $0x8] sm:$0xff] %v988_v50 }
 0x2c8   : > { %v1024_v62 = vmul.f32 %v990_v51, %v990_v51  ;;  %998 = vst [vmem:[%s2336_s20 + $0x18] sm:$0xff] %v990_v51  ;;  %1000 = vst [vmem:[%s2336_s20 + $0x28] sm:$0xff] %v992_v52  ;;  %v1014_v63 = vmul.f32 %v992_v52, %v988_v50  ;;  %v1049_v0 = vmul.f32 %v994_v53, %v994_v53 }
 0x2c9   : > { %1002 = vst [vmem:[%s2336_s20 + $0x38] sm:$0xff] %v994_v53  ;;  %v1054_v1 = vmul.f32 %v988_v50, %v2283_v25  ;;  %v1009_v2 = vmul.f32 %v990_v51, %v988_v50  ;;  %v1040_v3 = vadd.f32 %v1039_v59, %v1038_v45  ;;  %v1005_v4 = vadd.f32 %v1004_v60, %v1003_v46 }
 0x2ca   : > { %v1075_v5 = vadd.f32 %v1074_v61, %v1073_v47  ;;  %v1025_v6 = vadd.f32 %v1024_v62, %v1023_v36  ;;  %v1015_v7 = vadd.f32 %v1014_v63, %v1013_v29  ;;  %v1050_v8 = vadd.f32 %v1049_v0, %v1048_v48 }
 0x2cb   : > { %v1055_v9 = vadd.f32 %v1054_v1, %v1053_v49  ;;  %v1010_v10 = vadd.f32 %v1009_v2, %v1008_v54  ;;  %1041 = vadd.xlane.f32.xlu0 %v1040_v3  ;;  %1006 = vadd.xlane.f32.xlu1 %v1005_v4  ;;  %v1029_v11 = vmul.f32 %v992_v52, %v990_v51 }
 0x2cc   : > { %v1019_v12 = vmul.f32 %v994_v53, %v988_v50  ;;  %v1059_v13 = vmul.f32 %v990_v51, %v2283_v25  ;;  %v1078_v14 = vmul.f32 %v989_v40, %v2299_v21  ;;  %v1079_v15 = vmul.f32 %v990_v51, %v2287_v26 }
 0x2cd   : > { %v1043_v16 = vmul.f32 %v2330_v42, %v2328_v41  ;;  %v1044_v17 = vmul.f32 %v994_v53, %v992_v52  ;;  %v1030_v18 = vadd.f32 %v1029_v11, %v1028_v56  ;;  %v1033_v23 = vmul.f32 %v2330_v42, %v989_v40 }
 0x2ce   : > { %v1020_v20 = vadd.f32 %v1019_v12, %v1018_v57  ;;  %v1060_v22 = vadd.f32 %v1059_v13, %v1058_v58  ;;  %v1080_v55 = vadd.f32 %v1079_v15, %v1078_v14  ;;  %v1034_v27 = vmul.f32 %v994_v53, %v990_v51 }
 0x2cf   : > { %v1045_v24 = vadd.f32 %v1044_v17, %v1043_v16  ;;  %v1063_v28 = vmul.f32 %v2328_v41, %v2295_v19  ;;  %1076 = vadd.xlane.f32.xlu0 %v1075_v5  ;;  %1026 = vadd.xlane.f32.xlu1 %v1025_v6  ;;  %v1064_v30 = vmul.f32 %v992_v52, %v2283_v25 }
 0x2d0   : > { %v1083_v31 = vmul.f32 %v2328_v41, %v2299_v21  ;;  %v1084_v32 = vmul.f32 %v992_v52, %v2287_v26  ;;  %v1035_v33 = vadd.f32 %v1034_v27, %v1033_v23  ;;  %v1088_v34 = vmul.f32 %v2330_v42, %v2299_v21 }
 0x2d1   : > { %v1089_v35 = vmul.f32 %v994_v53, %v2287_v26  ;;  %v1068_v37 = vmul.f32 %v2330_v42, %v2295_v19  ;;  %v1065_v38 = vadd.f32 %v1064_v30, %v1063_v28  ;;  %v1069_v40 = vmul.f32 %v994_v53, %v2283_v25 }
 0x2d2   : > { %v1085_v39 = vadd.f32 %v1084_v32, %v1083_v31 }
 0x2d3   : > { %v1090_v43 = vadd.f32 %v1089_v35, %v1088_v34  ;;  %1016 = vadd.xlane.f32.xlu0 %v1015_v7  ;;  %1051 = vadd.xlane.f32.xlu1 %v1050_v8  ;;  %v1070_v41 = vadd.f32 %v1069_v40, %v1068_v37 }
 0x2d7   : > { %1056 = vadd.xlane.f32.xlu0 %v1055_v9  ;;  %1011 = vadd.xlane.f32.xlu1 %v1010_v10 }
 0x2db   : > { %1031 = vadd.xlane.f32.xlu0 %v1030_v18  ;;  %1021 = vadd.xlane.f32.xlu1 %v1020_v20 }
 0x2df   : > { %1061 = vadd.xlane.f32.xlu0 %v1060_v22  ;;  %1081 = vadd.xlane.f32.xlu1 %v1080_v55 }
 0x2e3   : > { %1046 = vadd.xlane.f32.xlu0 %v1045_v24  ;;  %1036 = vadd.xlane.f32.xlu1 %v1035_v33 }
 0x2e7   : > { %1066 = vadd.xlane.f32.xlu0 %v1065_v38  ;;  %1086 = vadd.xlane.f32.xlu1 %v1085_v39 }
 0x2eb   : > { %1091 = vadd.xlane.f32.xlu1 %v1090_v43 }
 0x2ef   : > { %1071 = vadd.xlane.f32.xlu1 %v1070_v41 }
 0x2f0   : > { %1859 = shalt.err (!%p1856_p7)
}
 0x2f1   : > { %s1860_s27 = scalar_lea.hbm %s2379_s23, 1024  ;;  %s1864_s15 = scalar_lea.hbm %s2537_s6, 2048 }
 0x2f2   : > { %p1861_p0 = scmp.ne.s32.totalorder %s2379_s23, %s1860_s27  ;;  %p1865_p2 = scmp.lt.u32.totalorder %s2379_s23, %s2537_s6 }
 0x2f3   : > { %p1866_p1 = scmp.lt.u32.totalorder %s1864_s15, %s1860_s27  ;;  %p1868_p10 = scmp.lt.u32.totalorder %s1860_s27, %s2379_s23 }
 0x2f4   : > { %p1862_p3 = pnand %p1861_p0, %p2575_p11 }
 0x2f5   : > { %p1867_p9 = por %p1866_p1, %p1865_p2 }
 0x2f6   : > { %p1863_p8 = pneg %p1862_p3 }
 0x2f7   : > { %p1869_p4 = por %p1868_p10, %p1867_p9 }
 0x2f9   : > { %p1870_p13 = pnand %p1869_p4, %p1863_p8 }
 0x2fb   : > { %1873 = shalt.err (!%p1870_p13)
}
 0x2fc   : > { %1620 = dma.vmem_to_hbm [thread:$0]  (%p2575_p11), %s1249_s2, 1024, %s2379_s23, %s1230_s11   ;;  %v1097_v25 = vpop.xlane.xlu0 %1096  ;;  %vm1227_vm0 = vcmask 7168  }
 0x2fd   : > { %p373_p11 = scmp.lt.s32.totalorder %s2036_s10, 1 }
 0x2ff   : > { %s2589_s10 = smov (!%p373_p11, %s2036_s10), 1 }
 0x300   : > { %v1102_v26 = vpop.xlane.xlu0 %1101  ;;  %s1404_s22 = sshll.u32 %s2589_s10, 3 }
 0x301   : > { %v1103_v19 = vadd.f32 %v1102_v26, %v1097_v25  ;;  %s376_s19 = scalar_lea.vmem %s2538_s7, %s1404_s22 }
 0x358   : > { %v1042_v21 = vpop.xlane.xlu0 %1041  ;;  %v1007_v42 = vpop.xlane.xlu1 %1006 }
 0x359   : > { %v1104_v44 = vadd.f32 %v1103_v19, %v1007_v42 }
 0x35c   : > { %v1077_v45 = vpop.xlane.xlu0 %1076  ;;  %v1027_v46 = vpop.xlane.xlu1 %1026 }
 0x35d   : > { %v1105_v47 = vadd.f32 %v1104_v44, %v1027_v46  ;;  %v1108_v50 = vmul.f32 2.0, %v1077_v45 }
 0x35f   : > { %v1106_v36 = vadd.f32 %v1105_v47, %v1042_v21 }
 0x360   : > { %v1017_v29 = vpop.xlane.xlu0 %1016  ;;  %v1052_v48 = vpop.xlane.xlu1 %1051 }
 0x361   : > { %v1107_v49 = vadd.f32 %v1106_v36, %v1052_v48  ;;  %v1112_v58 = vmul.f32 2.0, %v1017_v29 }
 0x363   : > { %v2400_v54 = vsub.f32 %v1107_v49, %v1108_v50 }
 0x364   : > { %v1012_v51 = vpop.xlane.xlu1 %1011  ;;  %v1057_v52 = vpop.xlane.xlu0 %1056 }
 0x365   : > { %v1110_v53 = vmul.f32 2.0, %v1012_v51  ;;  %v1128_v60 = vmul.f32 2.0, %v1057_v52  ;;  %v2419_v8 = vadd.f32 %v1112_v58, %v2400_v54 }
 0x367   : > { %v2403_v56 = vadd.f32 %v1110_v53, %v2400_v54  ;;  %v1129_v1 = vsub.f32 %v1107_v49, %v1128_v60 }
 0x368   : > { %v1022_v57 = vpop.xlane.xlu1 %1021  ;;  %v1032_v59 = vpop.xlane.xlu0 %1031 }
 0x369   : > { %v2406_v61 = vadd.f32 %v1112_v58, %v2403_v56  ;;  %v2408_v62 = vmul.f32 2.0, %v1022_v57  ;;  %v2416_v7 = vmul.f32 2.0, %v1032_v59  ;;  %v1145_v17 = vadd.f32 %v1129_v1, %v1110_v53 }
 0x36a   : > { %v1158_v39 = vadd.f32 %v1129_v1, %v1112_v58 }
 0x36b   : > { %v1115_v2 = vadd.f32 %v2408_v62, %v2406_v61  ;;  %v1138_v14 = vadd.f32 %v2419_v8, %v2408_v62  ;;  %v1151_v32 = vadd.f32 %v2408_v62, %v2403_v56  ;;  %v1164_v40 = vadd.f32 %v2408_v62, %v2400_v54 }
 0x36c   : > { %v1082_v63 = vpop.xlane.xlu1 %1081  ;;  %v1062_v4 = vpop.xlane.xlu0 %1061  ;;  %v1170_v21 = vadd.f32 %v1145_v17, %v1112_v58  ;;  %v1182_v51 = vadd.f32 %v1129_v1, %v2408_v62 }
 0x36d   : > { %v2410_v0 = vmul.f32 2.0, %v1082_v63  ;;  %v2421_v10 = vmul.f32 2.0, %v1062_v4 }
 0x36e   : > { %v1217_v60 = vadd.f32 %v1170_v21, %v2408_v62 }
 0x36f   : > { %v1117_v5 = vsub.f32 %v1115_v2, %v2410_v0  ;;  %v1130_v6 = vsub.f32 %v1129_v1, %v2410_v0  ;;  %v1140_v18 = vsub.f32 %v1138_v14, %v2421_v10  ;;  %v1146_v23 = vsub.f32 %v1145_v17, %v2421_v10 }
 0x370   : > { %v1037_v3 = vpop.xlane.xlu1 %1036  ;;  %v1047_v15 = vpop.xlane.xlu0 %1046  ;;  %v1152_v43 = vsub.f32 %v1151_v32, %v2410_v0  ;;  %v1165_v42 = vsub.f32 %v1164_v40, %v2421_v10  ;;  %v1159_v44 = vsub.f32 %v1158_v39, %v2410_v0  ;;  %v1171_v36 = vsub.f32 %v1170_v21, %v2421_v10 }
 0x371   : > { %v1119_v11 = vadd.f32 %v2416_v7, %v1117_v5  ;;  %v1131_v12 = vadd.f32 %v1130_v6, %v2416_v7  ;;  %v2425_v13 = vmul.f32 2.0, %v1037_v3  ;;  %v2435_v55 = vmul.f32 2.0, %v1047_v15 }
 0x372   : > { %v1176_v52 = vsub.f32 %v2406_v61, %v2410_v0  ;;  %v1166_v57 = vadd.f32 %v1165_v42, %v2416_v7  ;;  %v1183_v63 = vsub.f32 %v1182_v51, %v2410_v0  ;;  %v1172_v4 = vadd.f32 %v1171_v36, %v2416_v7 }
 0x373   : > { %v1121_v20 = vadd.f32 %v2425_v13, %v1119_v11  ;;  %v1132_v22 = vadd.f32 %v1131_v12, %v2425_v13  ;;  %v1153_v45 = vadd.f32 %v1152_v43, %v2425_v13  ;;  %v1160_v29 = vadd.f32 %v1159_v44, %v2425_v13 }
 0x374   : > { %v1087_v9 = vpop.xlane.xlu1 %1086  ;;  %v1067_v33 = vpop.xlane.xlu0 %1066  ;;  %v1210_v61 = vsub.f32 %v2400_v54, %v2421_v10  ;;  %v1177_v6 = vadd.f32 %v1176_v52, %v2416_v7  ;;  %v1193_v15 = vadd.f32 %v1145_v17, %v2408_v62 }
 0x375   : > { %v2429_v16 = vmul.f32 2.0, %v1087_v9  ;;  %v2449_v41 = vmul.f32 2.0, %v1067_v33 }
 0x376   : > { %v1211_v17 = vadd.f32 %v1210_v61, %v2416_v7 }
 0x377   : > { %v1123_v24 = vsub.f32 %v1121_v20, %v2429_v16  ;;  %v1133_v27 = vsub.f32 %v1132_v22, %v2429_v16  ;;  %v1141_v28 = vsub.f32 %v1140_v18, %v2429_v16  ;;  %v1147_v31 = vsub.f32 %v1146_v23, %v2429_v16 }
 0x378   : > { %v1092_v30 = vpop.xlane.xlu1 %1091  ;;  %v1155_v48 = vsub.f32 %v1153_v45, %v2449_v41  ;;  %v1161_v53 = vsub.f32 %v1160_v29, %v2449_v41  ;;  %v1167_v3 = vsub.f32 %v1166_v57, %v2449_v41  ;;  %v1173_v9 = vsub.f32 %v1172_v4, %v2449_v41 }
 0x379   : > { %v1125_v34 = vadd.f32 %v2435_v55, %v1123_v24  ;;  %v1134_v35 = vadd.f32 %v1133_v27, %v2435_v55  ;;  %v1142_v37 = vadd.f32 %v1141_v28, %v2435_v55  ;;  %v1126_v38 = vmul.f32 2.0, %v1092_v30 }
 0x37a   : > { %v1148_v25 = vadd.f32 %v1147_v31, %v2435_v55  ;;  %v1188_v18 = vsub.f32 %v2419_v8, %v2421_v10  ;;  %v1218_v20 = vsub.f32 %v1217_v60, %v2421_v10  ;;  %v1184_v22 = vadd.f32 %v1183_v63, %v2416_v7 }
 0x37b   : > { %v1127_v26 = vsub.f32 %v1125_v34, %v1126_v38  ;;  %v1135_v19 = vsub.f32 %v1134_v35, %v1126_v38  ;;  %v1143_v47 = vsub.f32 %v1142_v37, %v1126_v38  ;;  %v1156_v59 = vsub.f32 %v1155_v48, %v1126_v38 }
 0x37c   : > { %v1149_v50 = vsub.f32 %v1148_v25, %v1126_v38  ;;  %v1072_v2 = vpop.xlane.xlu1 %1071  ;;  %v1162_v1 = vsub.f32 %v1161_v53, %v1126_v38  ;;  %v1168_v12 = vsub.f32 %v1167_v3, %v1126_v38  ;;  %v1178_v23 = vsub.f32 %v1177_v6, %v2429_v16 }
 0x37d   : > { %v1136_v46 = vmin.f32 %v1127_v26, %v1135_v19  ;;  %v1179_v14 = vmul.f32 2.0, %v1072_v2  ;;  %v1174_v54 = vsub.f32 %v1173_v9, %v1126_v38  ;;  %v1204_v27 = vadd.f32 %v1158_v39, %v2408_v62 }
 0x37e   : > { %v1194_v28 = vsub.f32 %v1193_v15, %v2421_v10  ;;  %v1199_v30 = vsub.f32 %v2403_v56, %v2410_v0  ;;  %v1189_v31 = vadd.f32 %v1188_v18, %v2425_v13  ;;  %v1185_v8 = vsub.f32 %v1184_v22, %v2429_v16 }
 0x37f   : > { %v1144_v49 = vmin.f32 %v1136_v46, %v1143_v47  ;;  %v1180_v33 = vsub.f32 %v1178_v23, %v1179_v14  ;;  %v1205_v34 = vsub.f32 %v1204_v27, %v2410_v0  ;;  %v1219_v35 = vadd.f32 %v1218_v20, %v2416_v7 }
 0x380   : > { %v1195_v62 = vadd.f32 %v1194_v28, %v2425_v13  ;;  %v1200_v10 = vsub.f32 %v1199_v30, %v2449_v41  ;;  %v1190_v37 = vsub.f32 %v1189_v31, %v2429_v16  ;;  %v1186_v38 = vsub.f32 %v1185_v8, %v1179_v14 }
 0x381   : > { %v1150_v58 = vmin.f32 %v1144_v49, %v1149_v50  ;;  %v1212_v39 = vadd.f32 %v1211_v17, %v2425_v13  ;;  %v1206_v40 = vsub.f32 %v1205_v34, %v2449_v41  ;;  %v1220_v0 = vadd.f32 %v1219_v35, %v2425_v13 }
 0x382   : > { %v1196_v43 = vsub.f32 %v1195_v62, %v2429_v16  ;;  %v1191_v26 = vsub.f32 %v1190_v37, %v1179_v14  ;;  %v1201_v19 = vadd.f32 %v1200_v10, %v2435_v55 }
 0x383   : > { %v1157_v5 = vmin.f32 %v1150_v58, %v1156_v59  ;;  %v1213_v7 = vsub.f32 %v1212_v39, %v2449_v41  ;;  %v1221_v44 = vsub.f32 %v1220_v0, %v2449_v41  ;;  %v1207_v45 = vadd.f32 %v1206_v40, %v2435_v55 }
 0x384   : > { %v1197_v42 = vsub.f32 %v1196_v43, %v1179_v14  ;;  %v1202_v47 = vsub.f32 %v1201_v19, %v1179_v14 }
 0x385   : > { %v1163_v11 = vmin.f32 %v1157_v5, %v1162_v1  ;;  %v1214_v16 = vadd.f32 %v1213_v7, %v2435_v55  ;;  %v1208_v29 = vsub.f32 %v1207_v45, %v1179_v14  ;;  %v1222_v13 = vadd.f32 %v1221_v44, %v2435_v55 }
 0x387   : > { %v1169_v24 = vmin.f32 %v1163_v11, %v1168_v12  ;;  %v1215_v49 = vsub.f32 %v1214_v16, %v1179_v14  ;;  %v1223_v51 = vsub.f32 %v1222_v13, %v1179_v14 }
 0x389   : > { %v1175_v32 = vmin.f32 %v1169_v24, %v1174_v54 }
 0x38b   : > { %v1181_v56 = vmin.f32 %v1175_v32, %v1180_v33 }
 0x38d   : > { %v1187_v25 = vmin.f32 %v1181_v56, %v1186_v38 }
 0x38f   : > { %v1192_v21 = vmin.f32 %v1187_v25, %v1191_v26 }
 0x391   : > { %v1198_v46 = vmin.f32 %v1192_v21, %v1197_v42 }
 0x393   : > { %v1203_v36 = vmin.f32 %v1198_v46, %v1202_v47 }
 0x395   : > { %v1209_v48 = vmin.f32 %v1203_v36, %v1208_v29 }
 0x397   : > { %v1216_v50 = vmin.f32 %v1209_v48, %v1215_v49 }
 0x399   : > { %v1224_v52 = vmin.f32 %v1216_v50, %v1223_v51 }
 0x39b   : > { %v1226_v41 = vmul.f32 0.001953125, %v1224_v52 }
 0x39d   : > { %1228 = vst.msk [vmem:[%s376_s19] sm:$0xff] %vm1227_vm0, %v1226_v41 }
 0x39e PF: > { %s2576_s29 = sld [smem:[#allocation16_spill]]  ;;  %s2577_s23 = sld [smem:[#allocation19_spill]] }
 0x39f   : > { %p2579_p12 = scmp.ge.s32.totalorder %s1948_s30, 2 }
 0x3a4   : > { %s1263_s2 = sand.u32 1, %s2576_s29   ;;  %p2578_p5 = scmp.ne.s32.totalorder %s2577_s23, 0 }
 0x3a5   : > { %s1264_s11 = scalar_lea.sflag [#allocation4], %s1263_s2 }
 0x3a6   : > { %p1637_p6 = pnand %p2579_p12, %p2578_p5 }
 0x3a8   : > { %1919 = dma.done.wait (!%p1637_p6), %s1264_s11, 1024  }
 0x3a9   : > { %1921 = vsyncadd (!%p1637_p6), %s1264_s11, 4294966272  ;;  %s2580_s10 = sld [smem:[#allocation17_spill]]  ;;  %s2581_s29 = sld [smem:[#allocation18_spill]] }
 0x3aa   : > { %p25_p7 = scmp.ge.s32.totalorder %s2112_s17, 4   ;;  %s2582_s24 = smov %s1928_s25 }
 0x3ab   : > { %s2583_s25 = smov %s1932_s26  ;;  %s2584_s26 = smov %s2205_s8 }
 0x3ac   : > { %s2585_s27 = smov %s1940_s28  ;;  %s2587_s30 = smov %s2112_s17 }
 0x3ad   :  { %27 = sbr.rel (!%p25_p7) target bundleno = 13 (0xd), region = 122 }
 0x3af   : > { %s2586_s28 = smov %s2580_s10 }
 0x3b4   :  { %1276 = vsyncpa [#allocation3], 1 }
 0x3b5   :  { %1278 = vsyncpa [#allocation3 + $0x1], 1 }
 0x3b6   :  { %1279 = vsyncpa [#allocation6], 1 }
 0x3b7   :  { %1281 = vsyncpa [#allocation6 + $0x1], 1 }
 0x3b8   :  { %1282 = vsyncpa [#allocation9], 1 }
 0x3b9   :  { %1283 = vsyncpa [#allocation4], 1 }
 0x3ba   :  { %1285 = vsyncpa [#allocation4 + $0x1], 1 }

</bundles_post_ra>
